<compile_context>
chip_gen: v7x
topology: tpu7x:2x2x1
jax: 0.10.0
libtpu: 0.0.40
codegen_flags: <defaults>
</compile_context>

<pallas_src>
import functools

import jax
import jax.numpy as jnp
from jax import lax
from jax.experimental import pallas as pl
from jax.experimental.pallas import tpu as pltpu


def _conv_attn_kernel(x_ref, wqkv_ref, wo_ref, bo_ref, o_ref, *,
                      heads, dim_head):
    hidden = heads * dim_head

    x = x_ref[0]            # (C, L)   channels on sublanes, spatial on lanes
    wqkv = wqkv_ref[...]    # (3*hidden, C)  q rows pre-scaled by dim_head**-0.5
    wo = wo_ref[...]        # (dim_out, hidden)
    bo = bo_ref[...]        # (dim_out, 1)

    # Fused 1x1-conv q/k/v projections for all heads in a single MXU matmul.
    qkv = jnp.dot(wqkv, x, preferred_element_type=jnp.float32)   # (3*hidden, L)
    q = qkv[0:hidden]                   # (hidden, L), scale already folded in
    k = qkv[hidden:2 * hidden]          # (hidden, L)
    v = qkv[2 * hidden:3 * hidden]      # (hidden, L)

    # Per-head attention; heads is a tiny static constant -> unrolled here.
    outs = []
    for h in range(heads):
        lo, hi = h * dim_head, (h + 1) * dim_head
        q_h = q[lo:hi]                  # (dh, L)
        k_h = k[lo:hi]                  # (dh, L)
        v_h = v[lo:hi]                  # (dh, L)

        # sim[i, j] = sum_d q_h[d, i] * k_h[d, j]   -> (L, L)
        sim = lax.dot_general(q_h, k_h, (((0,), (0,)), ((), ())),
                              preferred_element_type=jnp.float32)

        # Numerically stable softmax over j; reciprocal goes to the EUP slot.
        sim = sim - jnp.max(sim, axis=-1, keepdims=True)
        p = jnp.exp(sim)
        denom = jnp.sum(p, axis=-1, keepdims=True)               # (L, 1)
        attn = p * pl.reciprocal(denom, approx=True)             # (L, L)

        # out_h[d, i] = sum_j v_h[d, j] * attn[i, j]  -> (dh, L)
        out_h = lax.dot_general(v_h, attn, (((1,), (1,)), ((), ())),
                                preferred_element_type=jnp.float32)
        outs.append(out_h)

    # Channel order of the pre-projection activation is (h d): channel = h*dh+d.
    out_all = jnp.concatenate(outs, axis=0)                      # (hidden, L)

    # to_out 1x1 conv over the full hidden dim (+ bias), single lane-dense store.
    y = jnp.dot(wo, out_all, preferred_element_type=jnp.float32) + bo
    o_ref[0] = y.astype(o_ref.dtype)


def conv_attention_pallas(x, w_qkv, w_out, b_out, *, heads, dim_head):
    """x: (B, C, H, W) NCHW.  w_qkv: (3*hidden, C) (1x1 conv, no bias);
    w_out: (dim_out, hidden); b_out: (dim_out,).  Returns (B, dim_out, H, W)."""
    B, C, H, W = x.shape
    L = H * W
    hidden = heads * dim_head
    dim_out = w_out.shape[0]
    scale = float(dim_head) ** -0.5

    # Free reshape of NCHW into the channels-on-sublane kernel layout.
    x_flat = x.reshape(B, C, L)

    # Fold the softmax scale into the q rows of the fused qkv weight (trace time).
    w_qkv_scaled = jnp.concatenate([w_qkv[:hidden] * scale, w_qkv[hidden:]],
                                   axis=0)                       # (3*hidden, C)
    bo = b_out.reshape(dim_out, 1)

    kernel = functools.partial(_conv_attn_kernel, heads=heads, dim_head=dim_head)

    flops_per_batch = (
        2 * (3 * hidden) * C * L          # fused qkv projection
        + heads * 2 * L * L * dim_head    # q^T k
        + heads * 2 * L * L * dim_head    # attn @ v
        + 2 * dim_out * hidden * L        # output projection
    )
    cost = pl.CostEstimate(
        flops=B * flops_per_batch,
        transcendentals=B * heads * (L * L + L),
        bytes_accessed=4 * (x_flat.size + B * dim_out * L
                            + w_qkv_scaled.size + w_out.size + b_out.size),
    )

    y_flat = pl.pallas_call(
        kernel,
        out_shape=jax.ShapeDtypeStruct((B, dim_out, L), jnp.float32),
        grid_spec=pltpu.PrefetchScalarGridSpec(
            num_scalar_prefetch=0,
            grid=(B,),
            in_specs=[
                pl.BlockSpec((1, C, L), lambda b: (b, 0, 0)),
                pl.BlockSpec((3 * hidden, C), lambda b: (0, 0)),
                pl.BlockSpec((dim_out, hidden), lambda b: (0, 0)),
                pl.BlockSpec((dim_out, 1), lambda b: (0, 0)),
            ],
            out_specs=pl.BlockSpec((1, dim_out, L), lambda b: (b, 0, 0)),
        ),
        compiler_params=pltpu.CompilerParams(
            dimension_semantics=("parallel",)),
        cost_estimate=cost,
    )(x_flat, w_qkv_scaled, w_out, bo)

    # Back to NCHW — again a free reshape, no transpose.
    return y_flat.reshape(B, dim_out, H, W)


def conv_attention_reference(x, w_qkv, w_out, b_out, *, heads, dim_head):
    """Plain-JAX reference matching the PyTorch forward exactly."""
    B, C, H, W = x.shape
    L = H * W
    hidden = heads * dim_head
    xf = x.reshape(B, C, L)
    qkv = jnp.einsum('oc,bcl->bol', w_qkv, xf)          # 1x1 conv, no bias
    q, k, v = (qkv[:, :hidden], qkv[:, hidden:2 * hidden], qkv[:, 2 * hidden:])
    split = lambda t: t.reshape(B, heads, dim_head, L)  # b (h c) l -> b h c l
    q, k, v = split(q), split(k), split(v)
    sim = jnp.einsum('bhdi,bhdj->bhij', q, k) * (dim_head ** -0.5)
    attn = jax.nn.softmax(sim, axis=-1)
    out = jnp.einsum('bhij,bhdj->bhid', attn, v)        # (B, h, L, d)
    out = jnp.transpose(out, (0, 1, 3, 2)).reshape(B, hidden, L)  # b (h d) l
    out = jnp.einsum('oc,bcl->bol', w_out, out) + b_out[None, :, None]
    return out.reshape(B, -1, H, W)


if __name__ == "__main__":
    # Module config: dim=4 channels, ndim=2, nheads=2, dim_head=8 -> hidden=16.
    B, dim, H, W = 2, 4, 16, 16          # L = 256 (lane-dense)
    heads, dim_head = 2, 8
    hidden = heads * dim_head

    key = jax.random.PRNGKey(0)
    kx, kqkv, kwo, kbo = jax.random.split(key, 4)

    x = jax.random.normal(kx, (B, dim, H, W), dtype=jnp.float32)
    # 1x1 conv kernels squeezed to 2D.
    w_qkv = jax.random.normal(kqkv, (3 * hidden, dim), dtype=jnp.float32) * 0.1
    w_out = jax.random.normal(kwo, (dim, hidden), dtype=jnp.float32) * 0.1
    b_out = jax.random.normal(kbo, (dim,), dtype=jnp.float32) * 0.1

    y = conv_attention_pallas(x, w_qkv, w_out, b_out,
                              heads=heads, dim_head=dim_head)
    y = jax.block_until_ready(y)

    y_ref = conv_attention_reference(x, w_qkv, w_out, b_out,
                                     heads=heads, dim_head=dim_head)
    assert y.shape == (B, dim, H, W)
    # Tolerance accounts for the EUP approximate reciprocal in the softmax
    # denominator (~2^-12 relative error) and fp reassociation from fusing.
    assert jnp.allclose(y, y_ref, atol=2e-3, rtol=2e-3), "mismatch vs reference"

    print("KERNEL_OK")
</pallas_src>

<mosaic_0001>
module attributes {stable_mosaic.version = 11 : i64} {
  func.func @_conv_attn_kernel(%arg0: i32, %arg1: memref<1x4x256xf32, #tpu.memory_space<vmem>>, %arg2: memref<48x4xf32, #tpu.memory_space<vmem>>, %arg3: memref<4x16xf32, #tpu.memory_space<vmem>>, %arg4: memref<4x1xf32, #tpu.memory_space<vmem>>, %arg5: memref<1x4x256xf32, #tpu.memory_space<vmem>>) attributes {dimension_semantics = [#tpu.dimension_semantics<parallel>], iteration_bounds = array<i64: 2>, scalar_prefetch = 0 : i64, scratch_operands = 0 : i64, tpu.core_type = #tpu.core_type<tc>, window_params = [{transform_indices = @transform_0, window_bounds = array<i64: 1, 4, 256>}, {pipeline_mode = #tpu.pipeline_mode<synchronous>, transform_indices = @transform_1, window_bounds = array<i64: 48, 4>}, {pipeline_mode = #tpu.pipeline_mode<synchronous>, transform_indices = @transform_2, window_bounds = array<i64: 4, 16>}, {pipeline_mode = #tpu.pipeline_mode<synchronous>, transform_indices = @transform_3, window_bounds = array<i64: 4, 1>}, {transform_indices = @transform_4, window_bounds = array<i64: 1, 4, 256>}]} {
    %c0 = arith.constant 0 : index
    %c0_0 = arith.constant 0 : index
    %c0_1 = arith.constant 0 : index
    %0 = vector.load %arg1[%c0, %c0_0, %c0_1] : memref<1x4x256xf32, #tpu.memory_space<vmem>>, vector<1x4x256xf32>
    %1 = vector.shape_cast %0 : vector<1x4x256xf32> to vector<4x256xf32>
    %c0_2 = arith.constant 0 : index
    %c0_3 = arith.constant 0 : index
    %2 = vector.load %arg2[%c0_2, %c0_3] : memref<48x4xf32, #tpu.memory_space<vmem>>, vector<48x4xf32>
    %c0_4 = arith.constant 0 : index
    %c0_5 = arith.constant 0 : index
    %3 = vector.load %arg3[%c0_4, %c0_5] : memref<4x16xf32, #tpu.memory_space<vmem>>, vector<4x16xf32>
    %c0_6 = arith.constant 0 : index
    %c0_7 = arith.constant 0 : index
    %4 = vector.load %arg4[%c0_6, %c0_7] : memref<4x1xf32, #tpu.memory_space<vmem>>, vector<4x1xf32>
    %cst = arith.constant dense<0.000000e+00> : vector<48x256xf32>
    %5 = tpu.matmul %2, %1, %cst {dimension_numbers = #tpu.dot_dimension_numbers<[1], [0], [0], [1], [0, 0, 1, 1], [], []>} : vector<48x4xf32>, vector<4x256xf32>, vector<48x256xf32> -> vector<48x256xf32>
    %6 = vector.extract_strided_slice %5 {offsets = [0, 0], sizes = [16, 256], strides = [1, 1]} : vector<48x256xf32> to vector<16x256xf32>
    %7 = vector.extract_strided_slice %5 {offsets = [16, 0], sizes = [16, 256], strides = [1, 1]} : vector<48x256xf32> to vector<16x256xf32>
    %8 = vector.extract_strided_slice %5 {offsets = [32, 0], sizes = [16, 256], strides = [1, 1]} : vector<48x256xf32> to vector<16x256xf32>
    %9 = vector.extract_strided_slice %6 {offsets = [0, 0], sizes = [8, 256], strides = [1, 1]} : vector<16x256xf32> to vector<8x256xf32>
    %10 = vector.extract_strided_slice %7 {offsets = [0, 0], sizes = [8, 256], strides = [1, 1]} : vector<16x256xf32> to vector<8x256xf32>
    %11 = vector.extract_strided_slice %8 {offsets = [0, 0], sizes = [8, 256], strides = [1, 1]} : vector<16x256xf32> to vector<8x256xf32>
    %cst_8 = arith.constant dense<0.000000e+00> : vector<256x256xf32>
    %12 = tpu.matmul %9, %10, %cst_8 {dimension_numbers = #tpu.dot_dimension_numbers<[0], [0], [1], [1], [0, 1, 1, 1], [], []>} : vector<8x256xf32>, vector<8x256xf32>, vector<256x256xf32> -> vector<256x256xf32>
    %cst_9 = arith.constant dense<0xFF800000> : vector<256xf32>
    %13 = vector.multi_reduction <maximumf>, %12, %cst_9 [1] : vector<256x256xf32> to vector<256xf32>
    %14 = vector.shape_cast %13 : vector<256xf32> to vector<256x1xf32>
    %15 = vector.broadcast %14 : vector<256x1xf32> to vector<256x256xf32>
    %16 = arith.subf %12, %15 : vector<256x256xf32>
    %17 = math.exp %16 : vector<256x256xf32>
    %cst_10 = arith.constant dense<0.000000e+00> : vector<256xf32>
    %18 = vector.multi_reduction <add>, %17, %cst_10 [1] : vector<256x256xf32> to vector<256xf32>
    %19 = vector.shape_cast %18 : vector<256xf32> to vector<256x1xf32>
    %20 = tpu.reciprocal %19 {approx = true} : vector<256x1xf32> -> vector<256x1xf32>
    %21 = vector.broadcast %20 : vector<256x1xf32> to vector<256x256xf32>
    %22 = arith.mulf %17, %21 : vector<256x256xf32>
    %cst_11 = arith.constant dense<0.000000e+00> : vector<8x256xf32>
    %23 = tpu.matmul %11, %22, %cst_11 {dimension_numbers = #tpu.dot_dimension_numbers<[1], [1], [0], [0], [0, 0, 1, 0], [], []>} : vector<8x256xf32>, vector<256x256xf32>, vector<8x256xf32> -> vector<8x256xf32>
    %24 = vector.extract_strided_slice %6 {offsets = [8, 0], sizes = [8, 256], strides = [1, 1]} : vector<16x256xf32> to vector<8x256xf32>
    %25 = vector.extract_strided_slice %7 {offsets = [8, 0], sizes = [8, 256], strides = [1, 1]} : vector<16x256xf32> to vector<8x256xf32>
    %26 = vector.extract_strided_slice %8 {offsets = [8, 0], sizes = [8, 256], strides = [1, 1]} : vector<16x256xf32> to vector<8x256xf32>
    %cst_12 = arith.constant dense<0.000000e+00> : vector<256x256xf32>
    %27 = tpu.matmul %24, %25, %cst_12 {dimension_numbers = #tpu.dot_dimension_numbers<[0], [0], [1], [1], [0, 1, 1, 1], [], []>} : vector<8x256xf32>, vector<8x256xf32>, vector<256x256xf32> -> vector<256x256xf32>
    %cst_13 = arith.constant dense<0xFF800000> : vector<256xf32>
    %28 = vector.multi_reduction <maximumf>, %27, %cst_13 [1] : vector<256x256xf32> to vector<256xf32>
    %29 = vector.shape_cast %28 : vector<256xf32> to vector<256x1xf32>
    %30 = vector.broadcast %29 : vector<256x1xf32> to vector<256x256xf32>
    %31 = arith.subf %27, %30 : vector<256x256xf32>
    %32 = math.exp %31 : vector<256x256xf32>
    %cst_14 = arith.constant dense<0.000000e+00> : vector<256xf32>
    %33 = vector.multi_reduction <add>, %32, %cst_14 [1] : vector<256x256xf32> to vector<256xf32>
    %34 = vector.shape_cast %33 : vector<256xf32> to vector<256x1xf32>
    %35 = tpu.reciprocal %34 {approx = true} : vector<256x1xf32> -> vector<256x1xf32>
    %36 = vector.broadcast %35 : vector<256x1xf32> to vector<256x256xf32>
    %37 = arith.mulf %32, %36 : vector<256x256xf32>
    %cst_15 = arith.constant dense<0.000000e+00> : vector<8x256xf32>
    %38 = tpu.matmul %26, %37, %cst_15 {dimension_numbers = #tpu.dot_dimension_numbers<[1], [1], [0], [0], [0, 0, 1, 0], [], []>} : vector<8x256xf32>, vector<256x256xf32>, vector<8x256xf32> -> vector<8x256xf32>
    %39 = tpu.concatenate %23, %38 in 0 : vector<8x256xf32>, vector<8x256xf32> -> vector<16x256xf32>
    %cst_16 = arith.constant dense<0.000000e+00> : vector<4x256xf32>
    %40 = tpu.matmul %3, %39, %cst_16 {dimension_numbers = #tpu.dot_dimension_numbers<[1], [0], [0], [1], [0, 0, 1, 1], [], []>} : vector<4x16xf32>, vector<16x256xf32>, vector<4x256xf32> -> vector<4x256xf32>
    %41 = vector.broadcast %4 : vector<4x1xf32> to vector<4x256xf32>
    %42 = arith.addf %40, %41 : vector<4x256xf32>
    %c0_17 = arith.constant 0 : index
    %c0_18 = arith.constant 0 : index
    %c0_19 = arith.constant 0 : index
    %43 = vector.load %arg5[%c0_17, %c0_18, %c0_19] : memref<1x4x256xf32, #tpu.memory_space<vmem>>, vector<1x4x256xf32>
    %44 = vector.shape_cast %43 : vector<1x4x256xf32> to vector<4x256xf32>
    %45 = vector.shape_cast %42 : vector<4x256xf32> to vector<1x4x256xf32>
    tpu.vector_store %arg5[%c0_17, %c0_18, %c0_19], %45 {strides = array<i32>} : memref<1x4x256xf32, #tpu.memory_space<vmem>>, vector<1x4x256xf32>,
    return
  }
  func.func @transform_0(%arg0: i32) -> (i32, i32, i32) {
    %c0_i32 = arith.constant 0 : i32
    %c0_i32_0 = arith.constant 0 : i32
    %c0_i32_1 = arith.constant 0 : i32
    return %arg0, %c0_i32, %c0_i32_0 : i32, i32, i32
  }
  func.func @transform_1(%arg0: i32) -> (i32, i32) {
    %c0_i32 = arith.constant 0 : i32
    %c0_i32_0 = arith.constant 0 : i32
    %c0_i32_1 = arith.constant 0 : i32
    return %c0_i32, %c0_i32_0 : i32, i32
  }
  func.func @transform_2(%arg0: i32) -> (i32, i32) {
    %c0_i32 = arith.constant 0 : i32
    %c0_i32_0 = arith.constant 0 : i32
    %c0_i32_1 = arith.constant 0 : i32
    return %c0_i32, %c0_i32_0 : i32, i32
  }
  func.func @transform_3(%arg0: i32) -> (i32, i32) {
    %c0_i32 = arith.constant 0 : i32
    %c0_i32_0 = arith.constant 0 : i32
    %c0_i32_1 = arith.constant 0 : i32
    return %c0_i32, %c0_i32_0 : i32, i32
  }
  func.func @transform_4(%arg0: i32) -> (i32, i32, i32) {
    %c0_i32 = arith.constant 0 : i32
    %c0_i32_0 = arith.constant 0 : i32
    %c0_i32_1 = arith.constant 0 : i32
    return %arg0, %c0_i32, %c0_i32_0 : i32, i32, i32
  }
}

</mosaic_0001>

<bundles_post_ra>
// kernel: tpu_custom_call.1
= control target key start
LH: loop header
LB: loop body
LE: loop exit
PB: predicated region body
PF: predicated region fallthrough
CT: control target
= control target key end

     0   :  { %9 = vsyncpa [#allocation3], 0  ;;  %s4581_s0 = inlined_call_operand.vmem [shape: f32[2,4,256], index: 0, kind: input, shape index: {}]   ;;  %s4582_s1 = inlined_call_operand.vmem [shape: f32[48,4], index: 1, kind: input, shape index: {}]   ;;  %s4583_s2 = inlined_call_operand.vmem [shape: f32[4,16], index: 2, kind: input, shape index: {}]   ;;  %s4584_s3 = inlined_call_operand.vmem [shape: f32[4,1], index: 3, kind: input, shape index: {}]   ;;  %s4585_s4 = inlined_call_operand.hbm [shape: f32[2,4,256], index: 4, kind: output, shape index: {}]  }
   0x1   :  { %11 = vsyncpa [#allocation3 + $0x1], 0  ;;  %s3166_s15 = smov 0   ;;  %s3168_s16 = smov 0  }
   0x2   :  { %s3170_s17 = smov 0   ;;  %s3172_s18 = smov 0  }
   0x3 LB: > { %s3187_s19 = sadd.s32 4294967295, %s3136_s18   ;;  %s2428_s20 = sadd.s32 4294967294, %s3136_s18   ;;  %s3136_s18 = sphi %s3172_s18, %s5032_s18   ;;  %s3132_s17 = sphi %s3170_s17, %s5031_s17   ;;  %s3128_s16 = sphi %s3168_s16, %s5030_s16   ;;  %s3124_s15 = sphi %s3166_s15, %s5029_s15  }
   0x4   : > { %s3191_s21 = sadd.s32 1, %s3136_s18   ;;  %s113_s22 = sadd.s32 1, %s3132_s17 }
   0x5   : > { %s110_s23 = ssub.s32 %s3136_s18, %s3191_s21  ;;  %p123_p0 = scmp.ne.s32.totalorder %s3132_s17, %s3128_s16 }
   0x6   : > { %p111_p1 = scmp.eq.s32.totalorder %s110_s23, 0  ;;  %p124_p2 = scmp.eq.s32.totalorder %s3187_s19, 1 }
   0x7   : > { %p129_p3 = scmp.ne.s32.totalorder %s3128_s16, %s3124_s15  ;;  %p130_p4 = scmp.eq.s32.totalorder %s2428_s20, 1 }
   0x8   : > { %s3202_s24 = scalar_select %p111_p1, %s3132_s17, %s113_s22  }
   0x9   : > { %p3204_p5 = por %p124_p2, %p123_p0  ;;  %p3208_p6 = por %p130_p4, %p129_p3 }
   0xa   : > { %p2431_p7 = scmp.ge.s32.totalorder %s3136_s18, 1  ;;  %p165_p8 = scmp.lt.s32.totalorder %s3136_s18, 3 }
   0xc   : > { %p166_p9 = pnand %p2431_p7, %p165_p8 }
   0xe   : > { %169 = sbr.rel (%p166_p9) target bundleno = 1752 (0x6d8), region = 36 }
  0x15   : > { %p191_p10 = scmp.lt.s32.totalorder %s3187_s19, 1  ;;  %v4586_v0 = vmov 0.0   ;;  %vm226_vm0 = vcmask 1043456   ;;  %v197_v3 = vld [vmem:[%s4582_s1] sm:$0xff]  ;;  %vm207_vm1 = vcmask 31744   ;;  %v198_v4 = vld [vmem:[%s4582_s1 + $0x8] sm:$0xff] }
  0x16   : > { %295 = vmatprep.mubr.f32.mxu0 %v4586_v0  ;;  %557 = vmatprep.mubr.f32.mxu1 %v4586_v0  ;;  %v199_v5 = vld [vmem:[%s4582_s1 + $0x10] sm:$0xff]  ;;  %v200_v6 = vld [vmem:[%s4582_s1 + $0x18] sm:$0xff]  ;;  %vm396_vm2 = vcmask 64512   ;;  %vm2274_vm3 = vcmask 130048   ;;  %s2514_s7 = sshll.u32 %s3187_s19, 7 }
  0x17   : > { %s192_s27 = scalar_select %p191_p10, %s3187_s19, 1 }
  0x18   : > { %s4539_s12 = scalar_lea.hbm %s4585_s4, %s2514_s7  ;;  %s3140_s19 = smov [#allocation2]  }
  0x19   : > { %s2513_s28 = sshll.u32 %s192_s27, 3  ;;  %s3078_s20 = sshll.u32 %s3140_s19, 4  ;;  %s3079_s20 = int_to_ptr.vmem [resolvable:$false] %s3078_s20 }
  0x1a   : > { %s195_s5 = scalar_lea.vmem %s4581_s0, %s2513_s28  ;;  %s3080_s22 = scalar_lea.vmem %s3079_s20, 256 }
  0x1b   : > { %v196_v1 = vld [vmem:[%s195_s5] sm:$0xff]  ;;  %s188_s5 = sand.u32 1, %s3128_s16  }
  0x1c   : > { %v206_v2 = vcombine.high %v196_v1, %v196_v1  ;;  %s2432_s6 = sshll.u32 %s188_s5, 3  ;;  %s2355_s13 = scalar_lea.sflag [#allocation3], %s188_s5 }
  0x1d   : > { %s190_s8 = scalar_lea.vmem [#allocation2], %s2432_s6 }
  0x1e   : > { %2435 = vmatprep.subr.msk.mxu0 %vm226_vm0, %v206_v2  ;;  %s2369_s9 = sshll.u32 %s190_s8, 4  ;;  %s4541_s9 = int_to_ptr.vmem [resolvable:$true] %s2369_s9 }
  0x1f   : > { %2436 = vmatpush1.msk.msra.mxu0 %vm226_vm0, %v196_v1  ;;  %s3074_s14 = scalar_lea.vmem %s4541_s9, 128  ;;  %p3081_p0 = scmp.lt.s32.totalorder %s4541_s9, %s3079_s20 }
  0x20   : > { %2437 = vmatmul.mubr.msk.f32.vlgmr.msra.gmra.mrb[0].mxu0 %vm207_vm1, %v197_v3  ;;  %p3075_p11 = scmp.ne.s32.totalorder %s4541_s9, %s3074_s14  ;;  %p3082_p1 = scmp.lt.s32.totalorder %s3080_s22, %s3074_s14 }
  0x21   : > { %301 = vmatprep.mubr.f32.mxu0 %v4586_v0 }
  0x22   : > { %p3076_p12 = pnand %p3075_p11, %p3204_p5  ;;  %p3083_p2 = por %p3082_p1, %p3081_p0 }
  0x24   : > { %2438 = vmatmul.mubr.msk.f32.gmra.mrb[2].mxu0 %vm207_vm1, %v198_v4  ;;  %p3077_p13 = pneg %p3076_p12 }
  0x25   : > { %307 = vmatprep.mubr.f32.mxu0 %v4586_v0 }
  0x26   : > { %p3084_p3 = pnand %p3083_p2, %p3077_p13 }
  0x28   : > { %2439 = vmatmul.mubr.msk.f32.gmra.mrb[4].mxu0 %vm207_vm1, %v199_v5 }
  0x29   : > { %313 = vmatprep.mubr.f32.mxu0 %v4586_v0 }
  0x2c   : > { %2440 = vmatmul.mubr.msk.f32.gmra.mrb[6].mxu0 %vm207_vm1, %v200_v6 }
  0x2d   : > { %319 = vmatprep.mubr.f32.mxu0 %v4586_v0 }
  0xf3   : > { %v297_v7 = vpop.f32.mrb[0].mxu0 }
  0xf4   : > { %332 = vxpose.xlu0.b32.start.end [1/1] (short) %v297_v7, 128  ;;  %v299_v8 = vpop.f32.mrb[1].mxu0 }
  0xf7   : > { %v303_v9 = vpop.f32.mrb[2].mxu0 }
  0xf8   : > { %1301 = vxpose.xlu1.b32.start.end [1/1] (short) %v303_v9, 128  ;;  %v305_v10 = vpop.f32.mrb[3].mxu0 }
  0xfb   : > { %v309_v11 = vpop.f32.mrb[4].mxu0 }
  0xfc   : > { %v311_v12 = vpop.f32.mrb[5].mxu0 }
  0xfd   : > { %493 = vmatprep.subr.mxu1 %v311_v12 }
  0xfe   : > { %494 = vmatpush1.msra.mxu1 %v309_v11 }
  0xff   : > { %v315_v18 = vpop.f32.mrb[6].mxu0 }
 0x100   : > { %v317_v19 = vpop.f32.mrb[7].mxu0 }
 0x101   : > { %1461 = vmatprep.subr.mxu1 %v317_v19 }
 0x131   : > { %364 = vxpose.xlu0.b32.start.end [1/1] (short) %v299_v8, 128 }
 0x135   : > { %1333 = vxpose.xlu1.b32.start.end [1/1] (short) %v305_v10, 128 }
 0x174   : > { %v348_v13 = vpop.trf.xlu0 }
 0x175   : > { %2443 = vmatmul.mubr.msk.f32.vlgmr.msra.gmra.mrb[0].mxu1 %vm396_vm2, %v348_v13 }
 0x176   : > { %563 = vmatprep.mubr.f32.mxu1 %v4586_v0  ;;  %1462 = vmatpush1.msra.mxu1 %v315_v18 }
 0x178   : > { %v349_v14 = vpop.trf.xlu0  ;;  %v1317_v33 = vpop.trf.xlu1 }
 0x179   : > { %2444 = vmatmul.mubr.msk.f32.gmra.mrb[2].mxu1 %vm396_vm2, %v349_v14 }
 0x17a   : > { %569 = vmatprep.mubr.f32.mxu1 %v4586_v0 }
 0x17c   : > { %v350_v15 = vpop.trf.xlu0  ;;  %v1318_v36 = vpop.trf.xlu1 }
 0x17d   : > { %2445 = vmatmul.mubr.msk.f32.gmra.mrb[4].mxu1 %vm396_vm2, %v350_v15 }
 0x17e   : > { %575 = vmatprep.mubr.f32.mxu1 %v4586_v0 }
 0x180   : > { %v351_v16 = vpop.trf.xlu0  ;;  %v1319_v38 = vpop.trf.xlu1 }
 0x181   : > { %2446 = vmatmul.mubr.msk.f32.gmra.mrb[6].mxu1 %vm396_vm2, %v351_v16 }
 0x182   : > { %581 = vmatprep.mubr.f32.mxu1 %v4586_v0 }
 0x184   : > { %v352_v17 = vpop.trf.xlu0  ;;  %v1320_v41 = vpop.trf.xlu1 }
 0x185   : > { %2447 = vmatmul.mubr.msk.f32.gmra.mrb[8].mxu1 %vm396_vm2, %v352_v17 }
 0x186   : > { %587 = vmatprep.mubr.f32.mxu1 %v4586_v0 }
 0x188   : > { %v353_v20 = vpop.trf.xlu0  ;;  %v1321_v43 = vpop.trf.xlu1 }
 0x189   : > { %2448 = vmatmul.mubr.msk.f32.gmra.mrb[10].mxu1 %vm396_vm2, %v353_v20 }
 0x18a   : > { %593 = vmatprep.mubr.f32.mxu1 %v4586_v0 }
 0x18c   : > { %v354_v21 = vpop.trf.xlu0  ;;  %v1322_v46 = vpop.trf.xlu1 }
 0x18d   : > { %2449 = vmatmul.mubr.msk.f32.gmra.mrb[12].mxu1 %vm396_vm2, %v354_v21 }
 0x18e   : > { %599 = vmatprep.mubr.f32.mxu1 %v4586_v0 }
 0x190   : > { %v355_v22 = vpop.trf.xlu0  ;;  %v1323_v48 = vpop.trf.xlu1 }
 0x191   : > { %2450 = vmatmul.mubr.msk.f32.gmra.mrb[14].mxu1 %vm396_vm2, %v355_v22 }
 0x192   : > { %605 = vmatprep.mubr.f32.mxu1 %v4586_v0 }
 0x194   : > { %v356_v23 = vpop.trf.xlu0  ;;  %v1324_v51 = vpop.trf.xlu1 }
 0x195   : > { %2451 = vmatmul.mubr.msk.f32.gmra.mrb[16].mxu1 %vm396_vm2, %v356_v23 }
 0x196   : > { %611 = vmatprep.mubr.f32.mxu1 %v4586_v0 }
 0x198   : > { %v357_v24 = vpop.trf.xlu0  ;;  %v1325_v53 = vpop.trf.xlu1 }
 0x199   : > { %2452 = vmatmul.mubr.msk.f32.gmra.mrb[18].mxu1 %vm396_vm2, %v357_v24 }
 0x19a   : > { %617 = vmatprep.mubr.f32.mxu1 %v4586_v0 }
 0x19c   : > { %v358_v25 = vpop.trf.xlu0  ;;  %v1326_v56 = vpop.trf.xlu1 }
 0x19d   : > { %2453 = vmatmul.mubr.msk.f32.gmra.mrb[20].mxu1 %vm396_vm2, %v358_v25 }
 0x19e   : > { %623 = vmatprep.mubr.f32.mxu1 %v4586_v0 }
 0x1a0   : > { %v359_v26 = vpop.trf.xlu0  ;;  %v1327_v57 = vpop.trf.xlu1 }
 0x1a1   : > { %2454 = vmatmul.mubr.msk.f32.gmra.mrb[22].mxu1 %vm396_vm2, %v359_v26 }
 0x1a2   : > { %629 = vmatprep.mubr.f32.mxu1 %v4586_v0 }
 0x1a4   : > { %v360_v27 = vpop.trf.xlu0  ;;  %v1328_v58 = vpop.trf.xlu1 }
 0x1a5   : > { %2455 = vmatmul.mubr.msk.f32.gmra.mrb[24].mxu1 %vm396_vm2, %v360_v27 }
 0x1a6   : > { %635 = vmatprep.mubr.f32.mxu1 %v4586_v0 }
 0x1a8   : > { %v361_v28 = vpop.trf.xlu0  ;;  %v1329_v59 = vpop.trf.xlu1 }
 0x1a9   : > { %2456 = vmatmul.mubr.msk.f32.gmra.mrb[26].mxu1 %vm396_vm2, %v361_v28 }
 0x1aa   : > { %641 = vmatprep.mubr.f32.mxu1 %v4586_v0 }
 0x1ac   : > { %v362_v29 = vpop.trf.xlu0  ;;  %v1330_v60 = vpop.trf.xlu1 }
 0x1ad   : > { %2457 = vmatmul.mubr.msk.f32.gmra.mrb[28].mxu1 %vm396_vm2, %v362_v29 }
 0x1ae   : > { %647 = vmatprep.mubr.f32.mxu1 %v4586_v0 }
 0x1b0   : > { %v363_v30 = vpop.trf.xlu0  ;;  %v1331_v61 = vpop.trf.xlu1 }
 0x1b1   : > { %2458 = vmatmul.mubr.msk.f32.gmra.mrb[30].mxu1 %vm396_vm2, %v363_v30 }
 0x1b2   : > { %653 = vmatprep.mubr.f32.mxu1 %v4586_v0 }
 0x1b4   : > { %v380_v31 = vpop.trf.xlu0  ;;  %v1332_v62 = vpop.trf.xlu1 }
 0x1b5   : > { %2459 = vmatmul.mubr.msk.f32.gmra.mrb[32].mxu1 %vm396_vm2, %v380_v31 }
 0x1b6   : > { %659 = vmatprep.mubr.f32.mxu1 %v4586_v0 }
 0x1b8   : > { %v381_v32 = vpop.trf.xlu0  ;;  %v1349_v63 = vpop.trf.xlu1 }
 0x1b9   : > { %2460 = vmatmul.mubr.msk.f32.gmra.mrb[34].mxu1 %vm396_vm2, %v381_v32 }
 0x1ba   : > { %665 = vmatprep.mubr.f32.mxu1 %v4586_v0 }
 0x1bc   : > { %v382_v34 = vpop.trf.xlu0  ;;  %v1350_v1 = vpop.trf.xlu1 }
 0x1bd   : > { %2461 = vmatmul.mubr.msk.f32.gmra.mrb[36].mxu1 %vm396_vm2, %v382_v34 }
 0x1be   : > { %671 = vmatprep.mubr.f32.mxu1 %v4586_v0 }
 0x1c0   : > { %v383_v35 = vpop.trf.xlu0  ;;  %v1351_v2 = vpop.trf.xlu1 }
 0x1c1   : > { %2462 = vmatmul.mubr.msk.f32.gmra.mrb[38].mxu1 %vm396_vm2, %v383_v35 }
 0x1c2   : > { %677 = vmatprep.mubr.f32.mxu1 %v4586_v0 }
 0x1c4   : > { %v384_v37 = vpop.trf.xlu0  ;;  %v1352_v3 = vpop.trf.xlu1 }
 0x1c5   : > { %2463 = vmatmul.mubr.msk.f32.gmra.mrb[40].mxu1 %vm396_vm2, %v384_v37 }
 0x1c6   : > { %683 = vmatprep.mubr.f32.mxu1 %v4586_v0 }
 0x1c8   : > { %v385_v39 = vpop.trf.xlu0  ;;  %v1353_v4 = vpop.trf.xlu1 }
 0x1c9   : > { %2464 = vmatmul.mubr.msk.f32.gmra.mrb[42].mxu1 %vm396_vm2, %v385_v39 }
 0x1ca   : > { %689 = vmatprep.mubr.f32.mxu1 %v4586_v0 }
 0x1cc   : > { %v386_v40 = vpop.trf.xlu0  ;;  %v1354_v5 = vpop.trf.xlu1 }
 0x1cd   : > { %2465 = vmatmul.mubr.msk.f32.gmra.mrb[44].mxu1 %vm396_vm2, %v386_v40 }
 0x1ce   : > { %695 = vmatprep.mubr.f32.mxu1 %v4586_v0 }
 0x1d0   : > { %v387_v42 = vpop.trf.xlu0  ;;  %v1355_v6 = vpop.trf.xlu1 }
 0x1d1   : > { %2466 = vmatmul.mubr.msk.f32.gmra.mrb[46].mxu1 %vm396_vm2, %v387_v42 }
 0x1d2   : > { %701 = vmatprep.mubr.f32.mxu1 %v4586_v0 }
 0x1d4   : > { %v388_v44 = vpop.trf.xlu0  ;;  %v1356_v7 = vpop.trf.xlu1 }
 0x1d5   : > { %2467 = vmatmul.mubr.msk.f32.gmra.mrb[48].mxu1 %vm396_vm2, %v388_v44 }
 0x1d6   : > { %707 = vmatprep.mubr.f32.mxu1 %v4586_v0 }
 0x1d8   : > { %v389_v45 = vpop.trf.xlu0  ;;  %v1357_v8 = vpop.trf.xlu1 }
 0x1d9   : > { %2468 = vmatmul.mubr.msk.f32.gmra.mrb[50].mxu1 %vm396_vm2, %v389_v45 }
 0x1da   : > { %713 = vmatprep.mubr.f32.mxu1 %v4586_v0 }
 0x1dc   : > { %v390_v47 = vpop.trf.xlu0  ;;  %v1358_v12 = vpop.trf.xlu1 }
 0x1dd   : > { %2469 = vmatmul.mubr.msk.f32.gmra.mrb[52].mxu1 %vm396_vm2, %v390_v47 }
 0x1de   : > { %719 = vmatprep.mubr.f32.mxu1 %v4586_v0 }
 0x1e0   : > { %v391_v49 = vpop.trf.xlu0  ;;  %v1359_v17 = vpop.trf.xlu1 }
 0x1e1   : > { %2470 = vmatmul.mubr.msk.f32.gmra.mrb[54].mxu1 %vm396_vm2, %v391_v49 }
 0x1e2   : > { %725 = vmatprep.mubr.f32.mxu1 %v4586_v0 }
 0x1e4   : > { %v392_v50 = vpop.trf.xlu0  ;;  %v1360_v23 = vpop.trf.xlu1 }
 0x1e5   : > { %2471 = vmatmul.mubr.msk.f32.gmra.mrb[56].mxu1 %vm396_vm2, %v392_v50 }
 0x1e6   : > { %731 = vmatprep.mubr.f32.mxu1 %v4586_v0 }
 0x1e8   : > { %v393_v52 = vpop.trf.xlu0  ;;  %v1361_v28 = vpop.trf.xlu1 }
 0x1e9   : > { %2472 = vmatmul.mubr.msk.f32.gmra.mrb[58].mxu1 %vm396_vm2, %v393_v52 }
 0x1ea   : > { %737 = vmatprep.mubr.f32.mxu1 %v4586_v0 }
 0x1ec   : > { %v394_v54 = vpop.trf.xlu0  ;;  %v1362_v34 = vpop.trf.xlu1 }
 0x1ed   : > { %2473 = vmatmul.mubr.msk.f32.gmra.mrb[60].mxu1 %vm396_vm2, %v394_v54 }
 0x1ee   : > { %743 = vmatprep.mubr.f32.mxu1 %v4586_v0 }
 0x1f0   : > { %v395_v55 = vpop.trf.xlu0  ;;  %v1363_v39 = vpop.trf.xlu1 }
 0x1f1   : > { %2474 = vmatmul.mubr.msk.f32.gmra.mrb[62].mxu1 %vm396_vm2, %v395_v55 }
 0x1f2   : > { %1525 = vmatprep.mubr.f32.mxu1 %v4586_v0 }
 0x1f4   : > { %v1364_v45 = vpop.trf.xlu1 }
 0x1f5   : > { %2475 = vmatmul.mubr.msk.f32.vlgmr.msra.gmra.mrb[64].mxu1 %vm396_vm2, %v1317_v33 }
 0x1f6   : > { %1531 = vmatprep.mubr.f32.mxu1 %v4586_v0 }
 0x1f9   : > { %2476 = vmatmul.mubr.msk.f32.gmra.mrb[66].mxu1 %vm396_vm2, %v1318_v36 }
 0x1fa   : > { %1537 = vmatprep.mubr.f32.mxu1 %v4586_v0 }
 0x1fd   : > { %2477 = vmatmul.mubr.msk.f32.gmra.mrb[68].mxu1 %vm396_vm2, %v1319_v38 }
 0x1fe   : > { %1543 = vmatprep.mubr.f32.mxu1 %v4586_v0 }
 0x201   : > { %2478 = vmatmul.mubr.msk.f32.gmra.mrb[70].mxu1 %vm396_vm2, %v1320_v41 }
 0x202   : > { %1549 = vmatprep.mubr.f32.mxu1 %v4586_v0 }
 0x205   : > { %2479 = vmatmul.mubr.msk.f32.gmra.mrb[72].mxu1 %vm396_vm2, %v1321_v43 }
 0x206   : > { %1555 = vmatprep.mubr.f32.mxu1 %v4586_v0 }
 0x209   : > { %2480 = vmatmul.mubr.msk.f32.gmra.mrb[74].mxu1 %vm396_vm2, %v1322_v46 }
 0x20a   : > { %1561 = vmatprep.mubr.f32.mxu1 %v4586_v0 }
 0x20d   : > { %2481 = vmatmul.mubr.msk.f32.gmra.mrb[76].mxu1 %vm396_vm2, %v1323_v48 }
 0x20e   : > { %1567 = vmatprep.mubr.f32.mxu1 %v4586_v0 }
 0x211   : > { %2482 = vmatmul.mubr.msk.f32.gmra.mrb[78].mxu1 %vm396_vm2, %v1324_v51 }
 0x212   : > { %1573 = vmatprep.mubr.f32.mxu1 %v4586_v0 }
 0x215   : > { %2483 = vmatmul.mubr.msk.f32.gmra.mrb[80].mxu1 %vm396_vm2, %v1325_v53 }
 0x216   : > { %1579 = vmatprep.mubr.f32.mxu1 %v4586_v0 }
 0x219   : > { %2484 = vmatmul.mubr.msk.f32.gmra.mrb[82].mxu1 %vm396_vm2, %v1326_v56 }
 0x21a   : > { %1585 = vmatprep.mubr.f32.mxu1 %v4586_v0 }
 0x21d   : > { %2485 = vmatmul.mubr.msk.f32.gmra.mrb[84].mxu1 %vm396_vm2, %v1327_v57 }
 0x21e   : > { %1591 = vmatprep.mubr.f32.mxu1 %v4586_v0 }
 0x221   : > { %2486 = vmatmul.mubr.msk.f32.gmra.mrb[86].mxu1 %vm396_vm2, %v1328_v58 }
 0x222   : > { %1597 = vmatprep.mubr.f32.mxu1 %v4586_v0 }
 0x225   : > { %2487 = vmatmul.mubr.msk.f32.gmra.mrb[88].mxu1 %vm396_vm2, %v1329_v59 }
 0x226   : > { %1603 = vmatprep.mubr.f32.mxu1 %v4586_v0 }
 0x229   : > { %2488 = vmatmul.mubr.msk.f32.gmra.mrb[90].mxu1 %vm396_vm2, %v1330_v60 }
 0x22a   : > { %1609 = vmatprep.mubr.f32.mxu1 %v4586_v0 }
 0x22d   : > { %2489 = vmatmul.mubr.msk.f32.gmra.mrb[92].mxu1 %vm396_vm2, %v1331_v61 }
 0x22e   : > { %1615 = vmatprep.mubr.f32.mxu1 %v4586_v0 }
 0x231   : > { %2490 = vmatmul.mubr.msk.f32.gmra.mrb[94].mxu1 %vm396_vm2, %v1332_v62 }
 0x232   : > { %1621 = vmatprep.mubr.f32.mxu1 %v4586_v0 }
 0x235   : > { %2491 = vmatmul.mubr.msk.f32.gmra.mrb[96].mxu1 %vm396_vm2, %v1349_v63 }
 0x236   : > { %1627 = vmatprep.mubr.f32.mxu1 %v4586_v0 }
 0x239   : > { %2492 = vmatmul.mubr.msk.f32.gmra.mrb[98].mxu1 %vm396_vm2, %v1350_v1 }
 0x23a   : > { %1633 = vmatprep.mubr.f32.mxu1 %v4586_v0 }
 0x23d   : > { %2493 = vmatmul.mubr.msk.f32.gmra.mrb[100].mxu1 %vm396_vm2, %v1351_v2 }
 0x23e   : > { %1639 = vmatprep.mubr.f32.mxu1 %v4586_v0 }
 0x241   : > { %2494 = vmatmul.mubr.msk.f32.gmra.mrb[102].mxu1 %vm396_vm2, %v1352_v3 }
 0x242   : > { %1645 = vmatprep.mubr.f32.mxu1 %v4586_v0 }
 0x245   : > { %2495 = vmatmul.mubr.msk.f32.gmra.mrb[104].mxu1 %vm396_vm2, %v1353_v4 }
 0x246   : > { %1651 = vmatprep.mubr.f32.mxu1 %v4586_v0 }
 0x248   : > { %v3347_v9 = vpop.f32.mrb[0].mxu1 }
 0x249   : > { %v3349_v10 = vpop.f32.mrb[1].mxu1  ;;  %2496 = vmatmul.mubr.msk.f32.gmra.mrb[106].mxu1 %vm396_vm2, %v1354_v5 }
 0x24a   : > { %v750_v11 = vmax.f32 %v3347_v9, %v3349_v10  ;;  %1657 = vmatprep.mubr.f32.mxu1 %v4586_v0 }
 0x24c   : > { %751 = vmax.xlane.f32.xlu0 %v750_v11  ;;  %v3355_v13 = vpop.f32.mrb[2].mxu1 }
 0x24d   : > { %v3357_v14 = vpop.f32.mrb[3].mxu1  ;;  %2497 = vmatmul.mubr.msk.f32.gmra.mrb[108].mxu1 %vm396_vm2, %v1355_v6 }
 0x24e   : > { %v753_v15 = vmax.f32 %v3355_v13, %v3357_v14  ;;  %1663 = vmatprep.mubr.f32.mxu1 %v4586_v0 }
 0x250   : > { %754 = vmax.xlane.f32.xlu1 %v753_v15  ;;  %v3363_v16 = vpop.f32.mrb[4].mxu1 }
 0x251   : > { %v3365_v18 = vpop.f32.mrb[5].mxu1  ;;  %2498 = vmatmul.mubr.msk.f32.gmra.mrb[110].mxu1 %vm396_vm2, %v1356_v7 }
 0x252   : > { %v756_v19 = vmax.f32 %v3363_v16, %v3365_v18  ;;  %1669 = vmatprep.mubr.f32.mxu1 %v4586_v0 }
 0x254   : > { %757 = vmax.xlane.f32.xlu1 %v756_v19  ;;  %v3371_v20 = vpop.f32.mrb[6].mxu1 }
 0x255   : > { %v3373_v21 = vpop.f32.mrb[7].mxu1  ;;  %2499 = vmatmul.mubr.msk.f32.gmra.mrb[112].mxu1 %vm396_vm2, %v1357_v8 }
 0x256   : > { %v759_v22 = vmax.f32 %v3371_v20, %v3373_v21  ;;  %1675 = vmatprep.mubr.f32.mxu1 %v4586_v0 }
 0x258   : > { %760 = vmax.xlane.f32.xlu1 %v759_v22  ;;  %v3379_v24 = vpop.f32.mrb[8].mxu1 }
 0x259   : > { %v3381_v25 = vpop.f32.mrb[9].mxu1  ;;  %2500 = vmatmul.mubr.msk.f32.gmra.mrb[114].mxu1 %vm396_vm2, %v1358_v12 }
 0x25a   : > { %v762_v26 = vmax.f32 %v3379_v24, %v3381_v25  ;;  %1681 = vmatprep.mubr.f32.mxu1 %v4586_v0 }
 0x25c   : > { %763 = vmax.xlane.f32.xlu0 %v762_v26  ;;  %v3387_v27 = vpop.f32.mrb[10].mxu1 }
 0x25d   : > { %v3389_v29 = vpop.f32.mrb[11].mxu1  ;;  %2501 = vmatmul.mubr.msk.f32.gmra.mrb[116].mxu1 %vm396_vm2, %v1359_v17 }
 0x25e   : > { %v765_v30 = vmax.f32 %v3387_v27, %v3389_v29  ;;  %1687 = vmatprep.mubr.f32.mxu1 %v4586_v0 }
 0x260   : > { %766 = vmax.xlane.f32.xlu1 %v765_v30  ;;  %v3395_v31 = vpop.f32.mrb[12].mxu1 }
 0x261   : > { %v3397_v32 = vpop.f32.mrb[13].mxu1  ;;  %2502 = vmatmul.mubr.msk.f32.gmra.mrb[118].mxu1 %vm396_vm2, %v1360_v23 }
 0x262   : > { %v768_v33 = vmax.f32 %v3395_v31, %v3397_v32  ;;  %1693 = vmatprep.mubr.f32.mxu1 %v4586_v0 }
 0x264   : > { %769 = vmax.xlane.f32.xlu0 %v768_v33  ;;  %v3403_v35 = vpop.f32.mrb[14].mxu1 }
 0x265   : > { %v3405_v36 = vpop.f32.mrb[15].mxu1  ;;  %2503 = vmatmul.mubr.msk.f32.gmra.mrb[120].mxu1 %vm396_vm2, %v1361_v28 }
 0x266   : > { %v771_v37 = vmax.f32 %v3403_v35, %v3405_v36  ;;  %1699 = vmatprep.mubr.f32.mxu1 %v4586_v0 }
 0x268   : > { %772 = vmax.xlane.f32.xlu1 %v771_v37  ;;  %v3411_v38 = vpop.f32.mrb[16].mxu1 }
 0x269   : > { %v3413_v40 = vpop.f32.mrb[17].mxu1  ;;  %2504 = vmatmul.mubr.msk.f32.gmra.mrb[122].mxu1 %vm396_vm2, %v1362_v34 }
 0x26a   : > { %v774_v41 = vmax.f32 %v3411_v38, %v3413_v40  ;;  %1705 = vmatprep.mubr.f32.mxu1 %v4586_v0 }
 0x26c   : > { %775 = vmax.xlane.f32.xlu0 %v774_v41  ;;  %v3419_v42 = vpop.f32.mrb[18].mxu1 }
 0x26d   : > { %v3421_v43 = vpop.f32.mrb[19].mxu1  ;;  %2505 = vmatmul.mubr.msk.f32.gmra.mrb[124].mxu1 %vm396_vm2, %v1363_v39 }
 0x26e   : > { %v777_v44 = vmax.f32 %v3419_v42, %v3421_v43  ;;  %1711 = vmatprep.mubr.f32.mxu1 %v4586_v0 }
 0x270   : > { %778 = vmax.xlane.f32.xlu1 %v777_v44  ;;  %v3427_v46 = vpop.f32.mrb[20].mxu1 }
 0x271   : > { %v3429_v47 = vpop.f32.mrb[21].mxu1  ;;  %2506 = vmatmul.mubr.msk.f32.gmra.mrb[126].mxu1 %vm396_vm2, %v1364_v45 }
 0x272   : > { %v780_v48 = vmax.f32 %v3427_v46, %v3429_v47  ;;  %2342 = vmatprep.mubr.f32.mxu1 %v4586_v0 }
 0x274   : > { %781 = vmax.xlane.f32.xlu0 %v780_v48  ;;  %v3435_v49 = vpop.f32.mrb[22].mxu1 }
 0x275   : > { %v3437_v50 = vpop.f32.mrb[23].mxu1 }
 0x276   : > { %v783_v51 = vmax.f32 %v3435_v49, %v3437_v50 }
 0x278   : > { %784 = vmax.xlane.f32.xlu1 %v783_v51  ;;  %v3441_v52 = vpop.f32.mrb[24].mxu1 }
 0x279   : > { %v3443_v53 = vpop.f32.mrb[25].mxu1 }
 0x27a   : > { %v786_v54 = vmax.f32 %v3441_v52, %v3443_v53 }
 0x27c   : > { %787 = vmax.xlane.f32.xlu0 %v786_v54  ;;  %v3447_v55 = vpop.f32.mrb[26].mxu1 }
 0x27d   : > { %v3449_v56 = vpop.f32.mrb[27].mxu1 }
 0x27e   : > { %v789_v57 = vmax.f32 %v3447_v55, %v3449_v56 }
 0x280   : > { %790 = vmax.xlane.f32.xlu1 %v789_v57  ;;  %v3453_v58 = vpop.f32.mrb[28].mxu1 }
 0x281   : > { %v3455_v59 = vpop.f32.mrb[29].mxu1 }
 0x282   : > { %v792_v60 = vmax.f32 %v3453_v58, %v3455_v59 }
 0x284   : > { %793 = vmax.xlane.f32.xlu0 %v792_v60  ;;  %v3459_v61 = vpop.f32.mrb[30].mxu1 }
 0x285   : > { %4727 = vst [vmem:[#allocation5_spill] sm:$0xff] %v3459_v61  ;;  %v3461_v62 = vpop.f32.mrb[31].mxu1 }
 0x286   : > { %4728 = vst [vmem:[#allocation6_spill] sm:$0xff] %v3461_v62  ;;  %v795_v63 = vmax.f32 %v3459_v61, %v3461_v62 }
 0x288   : > { %796 = vmax.xlane.f32.xlu1 %v795_v63  ;;  %v3465_v1 = vpop.f32.mrb[32].mxu1 }
 0x289   : > { %4729 = vst [vmem:[#allocation7_spill] sm:$0xff] %v3465_v1  ;;  %v3467_v2 = vpop.f32.mrb[33].mxu1 }
 0x28a   : > { %4730 = vst [vmem:[#allocation8_spill] sm:$0xff] %v3467_v2  ;;  %v798_v3 = vmax.f32 %v3465_v1, %v3467_v2 }
 0x28c   : > { %799 = vmax.xlane.f32.xlu0 %v798_v3  ;;  %v3471_v4 = vpop.f32.mrb[34].mxu1 }
 0x28d   : > { %4731 = vst [vmem:[#allocation9_spill] sm:$0xff] %v3471_v4  ;;  %v3473_v5 = vpop.f32.mrb[35].mxu1 }
 0x28e   : > { %4732 = vst [vmem:[#allocation10_spill] sm:$0xff] %v3473_v5  ;;  %v801_v6 = vmax.f32 %v3471_v4, %v3473_v5 }
 0x290   : > { %802 = vmax.xlane.f32.xlu1 %v801_v6  ;;  %v3477_v7 = vpop.f32.mrb[36].mxu1 }
 0x291   : > { %4733 = vst [vmem:[#allocation11_spill] sm:$0xff] %v3477_v7  ;;  %v3479_v8 = vpop.f32.mrb[37].mxu1 }
 0x292   : > { %4734 = vst [vmem:[#allocation12_spill] sm:$0xff] %v3479_v8  ;;  %v804_v11 = vmax.f32 %v3477_v7, %v3479_v8 }
 0x294   : > { %805 = vmax.xlane.f32.xlu0 %v804_v11  ;;  %v3483_v12 = vpop.f32.mrb[38].mxu1 }
 0x295   : > { %4735 = vst [vmem:[#allocation13_spill] sm:$0xff] %v3483_v12  ;;  %v3485_v15 = vpop.f32.mrb[39].mxu1 }
 0x296   : > { %4736 = vst [vmem:[#allocation14_spill] sm:$0xff] %v3485_v15  ;;  %v807_v17 = vmax.f32 %v3483_v12, %v3485_v15 }
 0x298   : > { %808 = vmax.xlane.f32.xlu1 %v807_v17  ;;  %v3489_v19 = vpop.f32.mrb[40].mxu1 }
 0x299   : > { %4737 = vst [vmem:[#allocation15_spill] sm:$0xff] %v3489_v19  ;;  %v3491_v22 = vpop.f32.mrb[41].mxu1 }
 0x29a   : > { %4738 = vst [vmem:[#allocation16_spill] sm:$0xff] %v3491_v22  ;;  %v810_v23 = vmax.f32 %v3489_v19, %v3491_v22 }
 0x29c   : > { %811 = vmax.xlane.f32.xlu0 %v810_v23  ;;  %v3495_v26 = vpop.f32.mrb[42].mxu1 }
 0x29d   : > { %4739 = vst [vmem:[#allocation17_spill] sm:$0xff] %v3495_v26  ;;  %v3497_v28 = vpop.f32.mrb[43].mxu1 }
 0x29e   : > { %4740 = vst [vmem:[#allocation18_spill] sm:$0xff] %v3497_v28  ;;  %v813_v30 = vmax.f32 %v3495_v26, %v3497_v28 }
 0x2a0   : > { %814 = vmax.xlane.f32.xlu1 %v813_v30  ;;  %v3501_v33 = vpop.f32.mrb[44].mxu1 }
 0x2a1   : > { %4741 = vst [vmem:[#allocation19_spill] sm:$0xff] %v3501_v33  ;;  %v3503_v34 = vpop.f32.mrb[45].mxu1 }
 0x2a2   : > { %4742 = vst [vmem:[#allocation20_spill] sm:$0xff] %v3503_v34  ;;  %v816_v37 = vmax.f32 %v3501_v33, %v3503_v34 }
 0x2a4   : > { %817 = vmax.xlane.f32.xlu0 %v816_v37  ;;  %v3507_v39 = vpop.f32.mrb[46].mxu1 }
 0x2a5   : > { %4743 = vst [vmem:[#allocation21_spill] sm:$0xff] %v3507_v39  ;;  %v3509_v41 = vpop.f32.mrb[47].mxu1 }
 0x2a6   : > { %4744 = vst [vmem:[#allocation22_spill] sm:$0xff] %v3509_v41  ;;  %v819_v44 = vmax.f32 %v3507_v39, %v3509_v41 }
 0x2a8   : > { %820 = vmax.xlane.f32.xlu1 %v819_v44  ;;  %v3513_v45 = vpop.f32.mrb[48].mxu1 }
 0x2a9   : > { %v3515_v48 = vpop.f32.mrb[49].mxu1 }
 0x2ac   : > { %v3519_v54 = vpop.f32.mrb[50].mxu1 }
 0x2ad   : > { %v3521_v57 = vpop.f32.mrb[51].mxu1 }
 0x2b0   : > { %v3525_v63 = vpop.f32.mrb[52].mxu1 }
 0x2b1   : > { %v3527_v3 = vpop.f32.mrb[53].mxu1 }
 0x2b4   : > { %v3531_v11 = vpop.f32.mrb[54].mxu1 }
 0x2b5   : > { %v3533_v17 = vpop.f32.mrb[55].mxu1 }
 0x2b8   : > { %v3537_v30 = vpop.f32.mrb[56].mxu1 }
 0x2b9   : > { %v3539_v37 = vpop.f32.mrb[57].mxu1 }
 0x2bc   : > { %v3543_v0 = vpop.f32.mrb[58].mxu1 }
 0x2bd   : > { %v3545_v60 = vpop.f32.mrb[59].mxu1 }
 0x2c0   : > { %v3549_v51 = vpop.f32.mrb[60].mxu1 }
 0x2c1   : > { %v3551_v41 = vpop.f32.mrb[61].mxu1 }
 0x2c4   : > { %v3555_v39 = vpop.f32.mrb[62].mxu1 }
 0x2c5   : > { %v3557_v34 = vpop.f32.mrb[63].mxu1 }
 0x2c8   : > { %v3561_v33 = vpop.f32.mrb[64].mxu1 }
 0x2c9   : > { %4745 = vst [vmem:[#allocation23_spill] sm:$0xff] %v3561_v33  ;;  %v3563_v28 = vpop.f32.mrb[65].mxu1 }
 0x2ca   : > { %4746 = vst [vmem:[#allocation24_spill] sm:$0xff] %v3563_v28 }
 0x2cc   : > { %v3567_v26 = vpop.f32.mrb[66].mxu1 }
 0x2cd   : > { %4747 = vst [vmem:[#allocation25_spill] sm:$0xff] %v3567_v26  ;;  %v3569_v22 = vpop.f32.mrb[67].mxu1 }
 0x2ce   : > { %4748 = vst [vmem:[#allocation26_spill] sm:$0xff] %v3569_v22 }
 0x2d0   : > { %v3573_v19 = vpop.f32.mrb[68].mxu1 }
 0x2d1   : > { %4749 = vst [vmem:[#allocation27_spill] sm:$0xff] %v3573_v19  ;;  %v3575_v15 = vpop.f32.mrb[69].mxu1 }
 0x2d2   : > { %4750 = vst [vmem:[#allocation28_spill] sm:$0xff] %v3575_v15 }
 0x2d4   : > { %v3579_v12 = vpop.f32.mrb[70].mxu1 }
 0x2d5   : > { %4751 = vst [vmem:[#allocation29_spill] sm:$0xff] %v3579_v12  ;;  %v3581_v8 = vpop.f32.mrb[71].mxu1 }
 0x2d6   : > { %4752 = vst [vmem:[#allocation30_spill] sm:$0xff] %v3581_v8 }
 0x2d8   : > { %v3585_v7 = vpop.f32.mrb[72].mxu1 }
 0x2d9   : > { %4753 = vst [vmem:[#allocation31_spill] sm:$0xff] %v3585_v7  ;;  %v752_v5 = vpop.xlane.xlu0 %751  ;;  %v3587_v4 = vpop.f32.mrb[73].mxu1 }
 0x2da   : > { %4754 = vst [vmem:[#allocation32_spill] sm:$0xff] %v3587_v4  ;;  %v846_v23 = vsub.f32 %v3347_v9, %v752_v5  ;;  %v847_v2 = vsub.f32 %v3349_v10, %v752_v5 }
 0x2dc   : > { %v910_v44 = vmul.f32 1.442695, %v846_v23  ;;  %v912_v15 = vmul.f32 1.442695, %v847_v2  ;;  %v3593_v19 = vpop.f32.mrb[74].mxu1 }
 0x2dd   : > { %4755 = vst [vmem:[#allocation33_spill] sm:$0xff] %v3593_v19  ;;  %v755_v62 = vpop.xlane.xlu1 %754  ;;  %v3595_v61 = vpop.f32.mrb[75].mxu1 }
 0x2de   : > { %4756 = vst [vmem:[#allocation34_spill] sm:$0xff] %v3595_v61  ;;  %2690 = vpow2.f32 %v910_v44  ;;  %v848_v6 = vsub.f32 %v3355_v13, %v755_v62  ;;  %v849_v8 = vsub.f32 %v3357_v14, %v755_v62 }
 0x2df   : > { %2692 = vpow2.f32 %v912_v15 }
 0x2e0   : > { %v914_v10 = vmul.f32 1.442695, %v848_v6  ;;  %v916_v5 = vmul.f32 1.442695, %v849_v8  ;;  %v3601_v12 = vpop.f32.mrb[76].mxu1 }
 0x2e1   : > { %4757 = vst [vmem:[#allocation35_spill] sm:$0xff] %v3601_v12  ;;  %v758_v23 = vpop.xlane.xlu1 %757  ;;  %v3603_v2 = vpop.f32.mrb[77].mxu1 }
 0x2e2   : > { %4758 = vst [vmem:[#allocation36_spill] sm:$0xff] %v3603_v2  ;;  %2694 = vpow2.f32 %v914_v10  ;;  %v850_v1 = vsub.f32 %v3363_v16, %v758_v23  ;;  %v851_v44 = vsub.f32 %v3365_v18, %v758_v23 }
 0x2e3   : > { %2696 = vpow2.f32 %v916_v5 }
 0x2e4   : > { %v918_v14 = vmul.f32 1.442695, %v850_v1  ;;  %v920_v62 = vmul.f32 1.442695, %v851_v44  ;;  %v3609_v9 = vpop.f32.mrb[78].mxu1 }
 0x2e5   : > { %4759 = vst [vmem:[#allocation37_spill] sm:$0xff] %v3609_v9  ;;  %v761_v15 = vpop.xlane.xlu1 %760  ;;  %v3611_v8 = vpop.f32.mrb[79].mxu1 }
 0x2e6   : > { %4760 = vst [vmem:[#allocation38_spill] sm:$0xff] %v3611_v8  ;;  %2698 = vpow2.f32 %v918_v14  ;;  %v852_v6 = vsub.f32 %v3371_v20, %v761_v15  ;;  %v853_v10 = vsub.f32 %v3373_v21, %v761_v15 }
 0x2e7   : > { %2700 = vpow2.f32 %v920_v62 }
 0x2e8   : > { %v3617_v18 = vpop.eup %2690  ;;  %v922_v23 = vmul.f32 1.442695, %v852_v6  ;;  %v924_v5 = vmul.f32 1.442695, %v853_v10  ;;  %v3619_v1 = vpop.f32.mrb[80].mxu1 }
 0x2e9   : > { %4761 = vst [vmem:[#allocation39_spill] sm:$0xff] %v3617_v18  ;;  %4762 = vst [vmem:[#allocation40_spill] sm:$0xff] %v3619_v1  ;;  %v3621_v44 = vpop.eup %2692  ;;  %v764_v13 = vpop.xlane.xlu0 %763 }
 0x2ea   : > { %v3623_v2 = vpop.f32.mrb[81].mxu1  ;;  %2702 = vpow2.f32 %v922_v23  ;;  %v854_v20 = vsub.f32 %v3379_v24, %v764_v13  ;;  %v855_v21 = vsub.f32 %v3381_v25, %v764_v13  ;;  %v1038_v14 = vadd.f32 %v3621_v44, %v3617_v18 }
 0x2eb   : > { %4763 = vst [vmem:[#allocation41_spill] sm:$0xff] %v3623_v2  ;;  %2704 = vpow2.f32 %v924_v5  ;;  %v4769_v18 = vmax.f32 %v3513_v45, %v3515_v48 }
 0x2ec   : > { %v3631_v15 = vpop.eup %2694  ;;  %v926_v6 = vmul.f32 1.442695, %v854_v20  ;;  %v928_v10 = vmul.f32 1.442695, %v855_v21  ;;  %1039 = vadd.xlane.f32.xlu0 %v1038_v14  ;;  %v3633_v16 = vpop.f32.mrb[82].mxu1 }
 0x2ed   : > { %4764 = vst [vmem:[#allocation42_spill] sm:$0xff] %v3631_v15  ;;  %4765 = vst [vmem:[#allocation43_spill] sm:$0xff] %v3633_v16  ;;  %v3635_v8 = vpop.eup %2696  ;;  %v767_v23 = vpop.xlane.xlu1 %766 }
 0x2ee   : > { %4766 = vst [vmem:[#allocation44_spill] sm:$0xff] %v3635_v8  ;;  %v3637_v24 = vpop.f32.mrb[83].mxu1  ;;  %2706 = vpow2.f32 %v926_v6  ;;  %v856_v25 = vsub.f32 %v3387_v27, %v767_v23  ;;  %v857_v13 = vsub.f32 %v3389_v29, %v767_v23  ;;  %v1041_v5 = vadd.f32 %v3635_v8, %v3631_v15 }
 0x2ef   : > { %4767 = vst [vmem:[#allocation45_spill] sm:$0xff] %v3637_v24  ;;  %2708 = vpow2.f32 %v928_v10  ;;  %v4772_v8 = vmax.f32 %v3519_v54, %v3521_v57 }
 0x2f0   : > { %v3645_v21 = vpop.eup %2698  ;;  %v930_v14 = vmul.f32 1.442695, %v856_v25  ;;  %v932_v62 = vmul.f32 1.442695, %v857_v13  ;;  %1042 = vadd.xlane.f32.xlu1 %v1041_v5  ;;  %823 = vmax.xlane.f32.xlu0 %v4769_v18  ;;  %v3650_v6 = vpop.f32.mrb[84].mxu1 }
 0x2f1   : > { %4768 = vst [vmem:[#allocation46_spill] sm:$0xff] %v3645_v21  ;;  %v3652_v27 = vpop.eup %2700  ;;  %v770_v29 = vpop.xlane.xlu0 %769 }
 0x2f2   : > { %4770 = vst [vmem:[#allocation47_spill] sm:$0xff] %v3652_v27  ;;  %v3654_v23 = vpop.f32.mrb[85].mxu1  ;;  %2710 = vpow2.f32 %v930_v14  ;;  %v858_v10 = vsub.f32 %v3395_v31, %v770_v29  ;;  %v859_v20 = vsub.f32 %v3397_v32, %v770_v29  ;;  %v1044_v25 = vadd.f32 %v3652_v27, %v3645_v21 }
 0x2f3   : > { %2712 = vpow2.f32 %v932_v62  ;;  %v4775_v27 = vmax.f32 %v3525_v63, %v3527_v3 }
 0x2f4   : > { %v3662_v18 = vpop.eup %2702  ;;  %v934_v5 = vmul.f32 1.442695, %v858_v10  ;;  %v936_v15 = vmul.f32 1.442695, %v859_v20  ;;  %1045 = vadd.xlane.f32.xlu0 %v1044_v25  ;;  %826 = vmax.xlane.f32.xlu1 %v4772_v8  ;;  %v3667_v14 = vpop.f32.mrb[86].mxu1 }
 0x2f5   : > { %4771 = vst [vmem:[#allocation48_spill] sm:$0xff] %v3662_v18  ;;  %v3669_v31 = vpop.eup %2704  ;;  %v773_v32 = vpop.xlane.xlu1 %772 }
 0x2f6   : > { %4773 = vst [vmem:[#allocation49_spill] sm:$0xff] %v3669_v31  ;;  %v3671_v29 = vpop.f32.mrb[87].mxu1  ;;  %2714 = vpow2.f32 %v934_v5  ;;  %v860_v62 = vsub.f32 %v3403_v35, %v773_v32  ;;  %v861_v13 = vsub.f32 %v3405_v36, %v773_v32  ;;  %v1047_v20 = vadd.f32 %v3669_v31, %v3662_v18 }
 0x2f7   : > { %2716 = vpow2.f32 %v936_v15 }
 0x2f8   : > { %v3679_v8 = vpop.eup %2706  ;;  %v938_v25 = vmul.f32 1.442695, %v860_v62  ;;  %v940_v21 = vmul.f32 1.442695, %v861_v13  ;;  %1048 = vadd.xlane.f32.xlu1 %v1047_v20  ;;  %829 = vmax.xlane.f32.xlu0 %v4775_v27  ;;  %v3684_v5 = vpop.f32.mrb[88].mxu1  ;;  %v201_v62 = vld [vmem:[%s4582_s1 + $0x20] sm:$0xff] }
 0x2f9   : > { %4774 = vst [vmem:[#allocation50_spill] sm:$0xff] %v3679_v8  ;;  %v3686_v35 = vpop.eup %2708  ;;  %v776_v36 = vpop.xlane.xlu0 %775  ;;  %2441 = vmatmul.mubr.msk.f32.gmra.mrb[8].mxu0 %vm207_vm1, %v201_v62 }
 0x2fa   : > { %4776 = vst [vmem:[#allocation51_spill] sm:$0xff] %v3686_v35  ;;  %v3688_v32 = vpop.f32.mrb[89].mxu1  ;;  %2718 = vpow2.f32 %v938_v25  ;;  %v862_v15 = vsub.f32 %v3411_v38, %v776_v36  ;;  %v863_v10 = vsub.f32 %v3413_v40, %v776_v36  ;;  %v1050_v13 = vadd.f32 %v3686_v35, %v3679_v8 }
 0x2fb   : > { %4777 = vst [vmem:[#allocation52_spill] sm:$0xff] %v3688_v32  ;;  %2720 = vpow2.f32 %v940_v21  ;;  %v4779_v38 = vmax.f32 %v3531_v11, %v3533_v17  ;;  %v4783_v35 = vmov 0.0  }
 0x2fc   : > { %v3700_v20 = vpop.eup %2710  ;;  %v942_v25 = vmul.f32 1.442695, %v862_v15  ;;  %v944_v18 = vmul.f32 1.442695, %v863_v10  ;;  %1051 = vadd.xlane.f32.xlu0 %v1050_v13  ;;  %v3705_v40 = vpop.f32.mrb[90].mxu1  ;;  %325 = vmatprep.mubr.f32.mxu0 %v4783_v35  ;;  %v4785_v35 = vmax.f32 %v3537_v30, %v3539_v37 }
 0x2fd   : > { %4778 = vst [vmem:[#allocation53_spill] sm:$0xff] %v3700_v20  ;;  %832 = vmax.xlane.f32.xlu1 %v4779_v38  ;;  %4780 = vst [vmem:[#allocation54_spill] sm:$0xff] %v3705_v40  ;;  %v3707_v36 = vpop.eup %2712  ;;  %v779_v8 = vpop.xlane.xlu1 %778 }
 0x2fe   : > { %4781 = vst [vmem:[#allocation55_spill] sm:$0xff] %v3707_v36  ;;  %v3709_v21 = vpop.f32.mrb[91].mxu1  ;;  %2722 = vpow2.f32 %v942_v25  ;;  %v864_v62 = vsub.f32 %v3419_v42, %v779_v8  ;;  %v865_v15 = vsub.f32 %v3421_v43, %v779_v8  ;;  %v1053_v10 = vadd.f32 %v3707_v36, %v3700_v20 }
 0x2ff   : > { %4782 = vst [vmem:[#allocation56_spill] sm:$0xff] %v3709_v21  ;;  %2724 = vpow2.f32 %v944_v18  ;;  %v4790_v36 = vmax.f32 %v3543_v0, %v3545_v60 }
 0x300   : > { %v3718_v38 = vpop.eup %2714  ;;  %v946_v27 = vmul.f32 1.442695, %v864_v62  ;;  %v948_v31 = vmul.f32 1.442695, %v865_v15  ;;  %835 = vmax.xlane.f32.xlu0 %v4785_v35  ;;  %v3723_v25 = vpop.f32.mrb[92].mxu1 }
 0x301   : > { %4784 = vst [vmem:[#allocation57_spill] sm:$0xff] %v3718_v38  ;;  %1054 = vadd.xlane.f32.xlu1 %v1053_v10  ;;  %4786 = vst [vmem:[#allocation58_spill] sm:$0xff] %v3723_v25  ;;  %v3725_v42 = vpop.eup %2716  ;;  %v782_v43 = vpop.xlane.xlu0 %781 }
 0x302   : > { %4787 = vst [vmem:[#allocation59_spill] sm:$0xff] %v3725_v42  ;;  %v3727_v8 = vpop.f32.mrb[93].mxu1  ;;  %2726 = vpow2.f32 %v946_v27  ;;  %v866_v18 = vsub.f32 %v3427_v46, %v782_v43  ;;  %v867_v13 = vsub.f32 %v3429_v47, %v782_v43  ;;  %v1056_v62 = vadd.f32 %v3725_v42, %v3718_v38 }
 0x303   : > { %4788 = vst [vmem:[#allocation60_spill] sm:$0xff] %v3727_v8  ;;  %2728 = vpow2.f32 %v948_v31  ;;  %v4795_v42 = vmax.f32 %v3549_v51, %v3551_v41 }
 0x304   : > { %v3735_v10 = vpop.eup %2718  ;;  %v950_v35 = vmul.f32 1.442695, %v866_v18  ;;  %v952_v20 = vmul.f32 1.442695, %v867_v13  ;;  %1057 = vadd.xlane.f32.xlu0 %v1056_v62  ;;  %v3740_v27 = vpop.f32.mrb[94].mxu1 }
 0x305   : > { %4789 = vst [vmem:[#allocation61_spill] sm:$0xff] %v3735_v10  ;;  %838 = vmax.xlane.f32.xlu1 %v4790_v36  ;;  %4791 = vst [vmem:[#allocation62_spill] sm:$0xff] %v3740_v27  ;;  %v3742_v46 = vpop.eup %2720  ;;  %v785_v47 = vpop.xlane.xlu1 %784 }
 0x306   : > { %4792 = vst [vmem:[#allocation63_spill] sm:$0xff] %v3742_v46  ;;  %v3744_v43 = vpop.f32.mrb[95].mxu1  ;;  %2730 = vpow2.f32 %v950_v35  ;;  %v868_v31 = vsub.f32 %v3435_v49, %v785_v47  ;;  %v869_v15 = vsub.f32 %v3437_v50, %v785_v47  ;;  %v1059_v13 = vadd.f32 %v3742_v46, %v3735_v10 }
 0x307   : > { %4793 = vst [vmem:[#allocation64_spill] sm:$0xff] %v3744_v43  ;;  %2732 = vpow2.f32 %v952_v20  ;;  %v4798_v46 = vmax.f32 %v3555_v39, %v3557_v34 }
 0x308   : > { %v3752_v36 = vpop.eup %2722  ;;  %v954_v62 = vmul.f32 1.442695, %v868_v31  ;;  %v956_v38 = vmul.f32 1.442695, %v869_v15  ;;  %841 = vmax.xlane.f32.xlu0 %v4795_v42  ;;  %v3757_v35 = vpop.f32.mrb[96].mxu1 }
 0x309   : > { %4794 = vst [vmem:[#allocation65_spill] sm:$0xff] %v3752_v36  ;;  %1060 = vadd.xlane.f32.xlu1 %v1059_v13  ;;  %v3759_v49 = vpop.eup %2724  ;;  %v788_v50 = vpop.xlane.xlu0 %787 }
 0x30a   : > { %4796 = vst [vmem:[#allocation66_spill] sm:$0xff] %v3759_v49  ;;  %v3761_v47 = vpop.f32.mrb[97].mxu1  ;;  %2734 = vpow2.f32 %v954_v62  ;;  %v870_v20 = vsub.f32 %v3441_v52, %v788_v50  ;;  %v871_v18 = vsub.f32 %v3443_v53, %v788_v50  ;;  %v1062_v15 = vadd.f32 %v3759_v49, %v3752_v36 }
 0x30b   : > { %2736 = vpow2.f32 %v956_v38  ;;  %v4801_v49 = vmax.f32 %v3561_v33, %v3563_v28  ;;  %v4812_v28 = vld [vmem:[#allocation28_spill] sm:$0xff] }
 0x30c   : > { %v3769_v42 = vpop.eup %2726  ;;  %v958_v13 = vmul.f32 1.442695, %v870_v20  ;;  %v960_v10 = vmul.f32 1.442695, %v871_v18  ;;  %1063 = vadd.xlane.f32.xlu0 %v1062_v15  ;;  %v3774_v62 = vpop.f32.mrb[98].mxu1 }
 0x30d   : > { %4797 = vst [vmem:[#allocation67_spill] sm:$0xff] %v3769_v42  ;;  %844 = vmax.xlane.f32.xlu1 %v4798_v46  ;;  %v3776_v52 = vpop.eup %2728  ;;  %v791_v53 = vpop.xlane.xlu1 %790 }
 0x30e   : > { %4799 = vst [vmem:[#allocation68_spill] sm:$0xff] %v3776_v52  ;;  %v3778_v50 = vpop.f32.mrb[99].mxu1  ;;  %2738 = vpow2.f32 %v958_v13  ;;  %v872_v38 = vsub.f32 %v3447_v55, %v791_v53  ;;  %v873_v31 = vsub.f32 %v3449_v56, %v791_v53  ;;  %v1065_v18 = vadd.f32 %v3776_v52, %v3769_v42 }
 0x30f   : > { %2740 = vpow2.f32 %v960_v10  ;;  %v4804_v52 = vmax.f32 %v3567_v26, %v3569_v22  ;;  %v4811_v26 = vld [vmem:[#allocation27_spill] sm:$0xff] }
 0x310   : > { %v3786_v46 = vpop.eup %2730  ;;  %v962_v15 = vmul.f32 1.442695, %v872_v38  ;;  %v964_v36 = vmul.f32 1.442695, %v873_v31  ;;  %1719 = vmax.xlane.f32.xlu0 %v4801_v49  ;;  %v3791_v13 = vpop.f32.mrb[100].mxu1  ;;  %v4809_v38 = vld [vmem:[#allocation6_spill] sm:$0xff]  ;;  %v4813_v33 = vmax.f32 %v4811_v26, %v4812_v28 }
 0x311   : > { %4800 = vst [vmem:[#allocation69_spill] sm:$0xff] %v3786_v46  ;;  %1066 = vadd.xlane.f32.xlu1 %v1065_v18  ;;  %v3793_v55 = vpop.eup %2732  ;;  %v794_v56 = vpop.xlane.xlu0 %793  ;;  %v4818_v26 = vld [vmem:[#allocation29_spill] sm:$0xff] }
 0x312   : > { %4802 = vst [vmem:[#allocation70_spill] sm:$0xff] %v3793_v55  ;;  %v3795_v53 = vpop.f32.mrb[101].mxu1  ;;  %2742 = vpow2.f32 %v962_v15  ;;  %v874_v10 = vsub.f32 %v3453_v58, %v794_v56  ;;  %v875_v20 = vsub.f32 %v3455_v59, %v794_v56  ;;  %v1068_v31 = vadd.f32 %v3793_v55, %v3786_v46 }
 0x313   : > { %2744 = vpow2.f32 %v964_v36  ;;  %v4808_v36 = vld [vmem:[#allocation5_spill] sm:$0xff] }
 0x314   : > { %v3803_v49 = vpop.eup %2734  ;;  %v966_v18 = vmul.f32 1.442695, %v874_v10  ;;  %v968_v42 = vmul.f32 1.442695, %v875_v20  ;;  %1069 = vadd.xlane.f32.xlu0 %v1068_v31  ;;  %v3808_v15 = vpop.f32.mrb[102].mxu1  ;;  %v4816_v10 = vld [vmem:[#allocation8_spill] sm:$0xff] }
 0x315   : > { %4803 = vst [vmem:[#allocation71_spill] sm:$0xff] %v3803_v49  ;;  %1722 = vmax.xlane.f32.xlu1 %v4804_v52  ;;  %4805 = vst [vmem:[#allocation72_spill] sm:$0xff] %v3808_v15  ;;  %v3810_v58 = vpop.eup %2736  ;;  %v797_v59 = vpop.xlane.xlu1 %796 }
 0x316   : > { %4806 = vst [vmem:[#allocation73_spill] sm:$0xff] %v3810_v58  ;;  %v3812_v56 = vpop.f32.mrb[103].mxu1  ;;  %2746 = vpow2.f32 %v966_v18  ;;  %v876_v46 = vsub.f32 %v4808_v36, %v797_v59  ;;  %v877_v55 = vsub.f32 %v4809_v38, %v797_v59  ;;  %v1071_v20 = vadd.f32 %v3810_v58, %v3803_v49 }
 0x317   : > { %4807 = vst [vmem:[#allocation74_spill] sm:$0xff] %v3812_v56  ;;  %2748 = vpow2.f32 %v968_v42  ;;  %v4815_v42 = vld [vmem:[#allocation7_spill] sm:$0xff]  ;;  %v4819_v56 = vld [vmem:[#allocation30_spill] sm:$0xff] }
 0x318   : > { %v3820_v52 = vpop.eup %2738  ;;  %v970_v31 = vmul.f32 1.442695, %v876_v46  ;;  %v972_v22 = vmul.f32 1.442695, %v877_v55  ;;  %1725 = vmax.xlane.f32.xlu0 %v4813_v33  ;;  %v3825_v18 = vpop.f32.mrb[104].mxu1  ;;  %v4820_v15 = vmax.f32 %v4818_v26, %v4819_v56  ;;  %v4823_v55 = vld [vmem:[#allocation10_spill] sm:$0xff]  ;;  %v4825_v26 = vmax.f32 %v3585_v7, %v3587_v4 }
 0x319   : > { %4810 = vst [vmem:[#allocation5_spill] sm:$0xff] %v3820_v52  ;;  %1072 = vadd.xlane.f32.xlu1 %v1071_v20  ;;  %v3827_v36 = vpop.eup %2740  ;;  %v800_v38 = vpop.xlane.xlu0 %799  ;;  %v4831_v7 = vmax.f32 %v3593_v19, %v3595_v61  ;;  %v4838_v19 = vld [vmem:[#allocation36_spill] sm:$0xff] }
 0x31a   : > { %4814 = vst [vmem:[#allocation6_spill] sm:$0xff] %v3827_v36  ;;  %v3829_v59 = vpop.f32.mrb[105].mxu1  ;;  %2750 = vpow2.f32 %v970_v31  ;;  %v878_v49 = vsub.f32 %v4815_v42, %v800_v38  ;;  %v879_v58 = vsub.f32 %v4816_v10, %v800_v38  ;;  %v1074_v46 = vadd.f32 %v3827_v36, %v3820_v52 }
 0x31b   : > { %2752 = vpow2.f32 %v972_v22  ;;  %v4822_v22 = vld [vmem:[#allocation9_spill] sm:$0xff] }
 0x31c   : > { %v3837_v33 = vpop.eup %2742  ;;  %v974_v20 = vmul.f32 1.442695, %v878_v49  ;;  %v976_v28 = vmul.f32 1.442695, %v879_v58  ;;  %1075 = vadd.xlane.f32.xlu0 %v1074_v46  ;;  %v3842_v31 = vpop.f32.mrb[106].mxu1  ;;  %v4829_v58 = vld [vmem:[#allocation12_spill] sm:$0xff] }
 0x31d   : > { %4817 = vst [vmem:[#allocation7_spill] sm:$0xff] %v3837_v33  ;;  %1728 = vmax.xlane.f32.xlu1 %v4820_v15  ;;  %v3844_v42 = vpop.eup %2744  ;;  %v803_v10 = vpop.xlane.xlu1 %802 }
 0x31e   : > { %4821 = vst [vmem:[#allocation8_spill] sm:$0xff] %v3844_v42  ;;  %v3846_v38 = vpop.f32.mrb[107].mxu1  ;;  %2754 = vpow2.f32 %v974_v20  ;;  %v880_v52 = vsub.f32 %v4822_v22, %v803_v10  ;;  %v881_v36 = vsub.f32 %v4823_v55, %v803_v10  ;;  %v1077_v49 = vadd.f32 %v3844_v42, %v3837_v33 }
 0x31f   : > { %2756 = vpow2.f32 %v976_v28  ;;  %v4828_v28 = vld [vmem:[#allocation11_spill] sm:$0xff] }
 0x320   : > { %v3854_v15 = vpop.eup %2746  ;;  %v978_v46 = vmul.f32 1.442695, %v880_v52  ;;  %v980_v56 = vmul.f32 1.442695, %v881_v36  ;;  %1731 = vmax.xlane.f32.xlu0 %v4825_v26  ;;  %v3859_v20 = vpop.f32.mrb[108].mxu1  ;;  %v4836_v36 = vld [vmem:[#allocation14_spill] sm:$0xff] }
 0x321   : > { %4824 = vst [vmem:[#allocation9_spill] sm:$0xff] %v3854_v15  ;;  %1078 = vadd.xlane.f32.xlu1 %v1077_v49  ;;  %v3861_v22 = vpop.eup %2748  ;;  %v806_v55 = vpop.xlane.xlu0 %805 }
 0x322   : > { %4826 = vst [vmem:[#allocation10_spill] sm:$0xff] %v3861_v22  ;;  %v3863_v10 = vpop.f32.mrb[109].mxu1  ;;  %2758 = vpow2.f32 %v978_v46  ;;  %v882_v33 = vsub.f32 %v4828_v28, %v806_v55  ;;  %v883_v42 = vsub.f32 %v4829_v58, %v806_v55  ;;  %v1080_v52 = vadd.f32 %v3861_v22, %v3854_v15 }
 0x323   : > { %4827 = vst [vmem:[#allocation75_spill] sm:$0xff] %v3863_v10  ;;  %2760 = vpow2.f32 %v980_v56  ;;  %v4835_v56 = vld [vmem:[#allocation13_spill] sm:$0xff]  ;;  %v4839_v10 = vmax.f32 %v3601_v12, %v4838_v19  ;;  %v4844_v12 = vld [vmem:[#allocation38_spill] sm:$0xff] }
 0x324   : > { %v3871_v26 = vpop.eup %2750  ;;  %v982_v49 = vmul.f32 1.442695, %v882_v33  ;;  %v984_v4 = vmul.f32 1.442695, %v883_v42  ;;  %1081 = vadd.xlane.f32.xlu0 %v1080_v52  ;;  %v3876_v46 = vpop.f32.mrb[110].mxu1  ;;  %v4842_v42 = vld [vmem:[#allocation16_spill] sm:$0xff] }
 0x325   : > { %4830 = vst [vmem:[#allocation11_spill] sm:$0xff] %v3871_v26  ;;  %1734 = vmax.xlane.f32.xlu1 %v4831_v7  ;;  %4832 = vst [vmem:[#allocation12_spill] sm:$0xff] %v3876_v46  ;;  %v3878_v28 = vpop.eup %2752  ;;  %v809_v58 = vpop.xlane.xlu1 %808 }
 0x326   : > { %4833 = vst [vmem:[#allocation76_spill] sm:$0xff] %v3878_v28  ;;  %v3880_v55 = vpop.f32.mrb[111].mxu1  ;;  %2762 = vpow2.f32 %v982_v49  ;;  %v884_v15 = vsub.f32 %v4835_v56, %v809_v58  ;;  %v885_v22 = vsub.f32 %v4836_v36, %v809_v58  ;;  %v1083_v33 = vadd.f32 %v3878_v28, %v3871_v26 }
 0x327   : > { %4834 = vst [vmem:[#allocation77_spill] sm:$0xff] %v3880_v55  ;;  %2764 = vpow2.f32 %v984_v4  ;;  %v4841_v4 = vld [vmem:[#allocation15_spill] sm:$0xff]  ;;  %v4845_v55 = vmax.f32 %v3609_v9, %v4844_v12  ;;  %v4850_v9 = vmax.f32 %v3619_v1, %v3623_v2  ;;  %v4855_v1 = vmax.f32 %v3633_v16, %v3637_v24 }
 0x328   : > { %v3888_v7 = vpop.eup %2754  ;;  %v986_v52 = vmul.f32 1.442695, %v884_v15  ;;  %v988_v61 = vmul.f32 1.442695, %v885_v22  ;;  %1737 = vmax.xlane.f32.xlu0 %v4839_v10  ;;  %v3893_v49 = vpop.f32.mrb[112].mxu1  ;;  %v4848_v22 = vld [vmem:[#allocation18_spill] sm:$0xff]  ;;  %v4860_v16 = vmax.f32 %v3650_v6, %v3654_v23 }
 0x329   : > { %4837 = vst [vmem:[#allocation13_spill] sm:$0xff] %v3888_v7  ;;  %1084 = vadd.xlane.f32.xlu1 %v1083_v33  ;;  %v3895_v56 = vpop.eup %2756  ;;  %v812_v36 = vpop.xlane.xlu0 %811 }
 0x32a   : > { %4840 = vst [vmem:[#allocation14_spill] sm:$0xff] %v3895_v56  ;;  %v3897_v58 = vpop.f32.mrb[113].mxu1  ;;  %2766 = vpow2.f32 %v986_v52  ;;  %v886_v26 = vsub.f32 %v4841_v4, %v812_v36  ;;  %v887_v28 = vsub.f32 %v4842_v42, %v812_v36  ;;  %v1086_v15 = vadd.f32 %v3895_v56, %v3888_v7 }
 0x32b   : > { %2768 = vpow2.f32 %v988_v61  ;;  %v4847_v61 = vld [vmem:[#allocation17_spill] sm:$0xff] }
 0x32c   : > { %v3905_v10 = vpop.eup %2758  ;;  %v990_v33 = vmul.f32 1.442695, %v886_v26  ;;  %v992_v19 = vmul.f32 1.442695, %v887_v28  ;;  %1087 = vadd.xlane.f32.xlu0 %v1086_v15  ;;  %v3910_v52 = vpop.f32.mrb[114].mxu1  ;;  %v4853_v28 = vld [vmem:[#allocation20_spill] sm:$0xff] }
 0x32d   : > { %4843 = vst [vmem:[#allocation15_spill] sm:$0xff] %v3905_v10  ;;  %1740 = vmax.xlane.f32.xlu1 %v4845_v55  ;;  %v3912_v4 = vpop.eup %2760  ;;  %v815_v42 = vpop.xlane.xlu1 %814 }
 0x32e   : > { %4846 = vst [vmem:[#allocation16_spill] sm:$0xff] %v3912_v4  ;;  %v3914_v36 = vpop.f32.mrb[115].mxu1  ;;  %2770 = vpow2.f32 %v990_v33  ;;  %v888_v7 = vsub.f32 %v4847_v61, %v815_v42  ;;  %v889_v56 = vsub.f32 %v4848_v22, %v815_v42  ;;  %v1089_v26 = vadd.f32 %v3912_v4, %v3905_v10 }
 0x32f   : > { %2772 = vpow2.f32 %v992_v19  ;;  %v4852_v19 = vld [vmem:[#allocation19_spill] sm:$0xff] }
 0x330   : > { %v3922_v55 = vpop.eup %2762  ;;  %v994_v15 = vmul.f32 1.442695, %v888_v7  ;;  %v996_v12 = vmul.f32 1.442695, %v889_v56  ;;  %1743 = vmax.xlane.f32.xlu0 %v4850_v9  ;;  %v3927_v33 = vpop.f32.mrb[116].mxu1  ;;  %v4858_v56 = vld [vmem:[#allocation22_spill] sm:$0xff] }
 0x331   : > { %4849 = vst [vmem:[#allocation17_spill] sm:$0xff] %v3922_v55  ;;  %1090 = vadd.xlane.f32.xlu1 %v1089_v26  ;;  %v3929_v61 = vpop.eup %2764  ;;  %v818_v22 = vpop.xlane.xlu0 %817 }
 0x332   : > { %4851 = vst [vmem:[#allocation18_spill] sm:$0xff] %v3929_v61  ;;  %v3931_v42 = vpop.f32.mrb[117].mxu1  ;;  %2774 = vpow2.f32 %v994_v15  ;;  %v890_v10 = vsub.f32 %v4852_v19, %v818_v22  ;;  %v891_v4 = vsub.f32 %v4853_v28, %v818_v22  ;;  %v1092_v7 = vadd.f32 %v3929_v61, %v3922_v55 }
 0x333   : > { %2776 = vpow2.f32 %v996_v12  ;;  %v4857_v12 = vld [vmem:[#allocation21_spill] sm:$0xff] }
 0x334   : > { %v3939_v9 = vpop.eup %2766  ;;  %v998_v26 = vmul.f32 1.442695, %v890_v10  ;;  %v1000_v2 = vmul.f32 1.442695, %v891_v4  ;;  %1093 = vadd.xlane.f32.xlu0 %v1092_v7  ;;  %v3944_v15 = vpop.f32.mrb[118].mxu1 }
 0x335   : > { %4854 = vst [vmem:[#allocation19_spill] sm:$0xff] %v3939_v9  ;;  %1746 = vmax.xlane.f32.xlu1 %v4855_v1  ;;  %v3946_v19 = vpop.eup %2768  ;;  %v821_v28 = vpop.xlane.xlu1 %820 }
 0x336   : > { %4856 = vst [vmem:[#allocation20_spill] sm:$0xff] %v3946_v19  ;;  %v3948_v22 = vpop.f32.mrb[119].mxu1  ;;  %2778 = vpow2.f32 %v998_v26  ;;  %v892_v55 = vsub.f32 %v4857_v12, %v821_v28  ;;  %v893_v61 = vsub.f32 %v4858_v56, %v821_v28  ;;  %v1095_v10 = vadd.f32 %v3946_v19, %v3939_v9 }
 0x337   : > { %2780 = vpow2.f32 %v1000_v2 }
 0x338   : > { %v3956_v1 = vpop.eup %2770  ;;  %v1002_v7 = vmul.f32 1.442695, %v892_v55  ;;  %v1004_v24 = vmul.f32 1.442695, %v893_v61  ;;  %1749 = vmax.xlane.f32.xlu0 %v4860_v16  ;;  %v3961_v26 = vpop.f32.mrb[120].mxu1  ;;  %v4863_v16 = vmax.f32 %v3667_v14, %v3671_v29 }
 0x339   : > { %4859 = vst [vmem:[#allocation21_spill] sm:$0xff] %v3956_v1  ;;  %1096 = vadd.xlane.f32.xlu1 %v1095_v10  ;;  %v3963_v12 = vpop.eup %2772  ;;  %v3965_v56 = vpop.f32.mrb[121].mxu1 }
 0x33a   : > { %4861 = vst [vmem:[#allocation22_spill] sm:$0xff] %v3963_v12  ;;  %2782 = vpow2.f32 %v1002_v7  ;;  %v1098_v2 = vadd.f32 %v3963_v12, %v3956_v1 }
 0x33b   : > { %2784 = vpow2.f32 %v1004_v24 }
 0x33c   : > { %v3971_v55 = vpop.eup %2774  ;;  %1099 = vadd.xlane.f32.xlu0 %v1098_v2  ;;  %v3976_v61 = vpop.f32.mrb[122].mxu1  ;;  %v4866_v2 = vmax.f32 %v3684_v5, %v3688_v32 }
 0x33d   : > { %4862 = vst [vmem:[#allocation78_spill] sm:$0xff] %v3971_v55  ;;  %1752 = vmax.xlane.f32.xlu1 %v4863_v16  ;;  %v3978_v10 = vpop.eup %2776  ;;  %v3980_v4 = vpop.f32.mrb[123].mxu1 }
 0x33e   : > { %4864 = vst [vmem:[#allocation79_spill] sm:$0xff] %v3978_v10  ;;  %v1101_v7 = vadd.f32 %v3978_v10, %v3971_v55 }
 0x340   : > { %v3986_v24 = vpop.eup %2778  ;;  %1755 = vmax.xlane.f32.xlu0 %v4866_v2  ;;  %v3991_v16 = vpop.f32.mrb[124].mxu1 }
 0x341   : > { %4865 = vst [vmem:[#allocation80_spill] sm:$0xff] %v3986_v24  ;;  %1102 = vadd.xlane.f32.xlu1 %v1101_v7  ;;  %v3993_v1 = vpop.eup %2780  ;;  %v3995_v12 = vpop.f32.mrb[125].mxu1  ;;  %v4869_v7 = vmax.f32 %v3705_v40, %v3709_v21 }
 0x342   : > { %4867 = vst [vmem:[#allocation81_spill] sm:$0xff] %v3993_v1  ;;  %v1104_v9 = vadd.f32 %v3993_v1, %v3986_v24 }
 0x344   : > { %v4001_v28 = vpop.eup %2782  ;;  %1105 = vadd.xlane.f32.xlu0 %v1104_v9  ;;  %v4006_v2 = vpop.f32.mrb[126].mxu1  ;;  %v4872_v9 = vmax.f32 %v3723_v25, %v3727_v8 }
 0x345   : > { %4868 = vst [vmem:[#allocation82_spill] sm:$0xff] %v4001_v28  ;;  %1758 = vmax.xlane.f32.xlu1 %v4869_v7  ;;  %v4008_v10 = vpop.eup %2784  ;;  %v4010_v19 = vpop.f32.mrb[127].mxu1  ;;  %v4873_v7 = vmax.f32 %v3740_v27, %v3744_v43 }
 0x346   : > { %4870 = vst [vmem:[#allocation83_spill] sm:$0xff] %v4008_v10  ;;  %4871 = vst [vmem:[#allocation84_spill] sm:$0xff] %v4010_v19  ;;  %v1107_v32 = vadd.f32 %v4008_v10, %v4001_v28 }
 0x348   : > { %1761 = vmax.xlane.f32.xlu0 %v4872_v9 }
 0x349   : > { %1108 = vadd.xlane.f32.xlu1 %v1107_v32 }
 0x34d   : > { %1764 = vmax.xlane.f32.xlu1 %v4873_v7 }
 0x379   : > { %v1040_v55 = vpop.xlane.xlu0 %1039 }
 0x37a   : > { %2786 = vrcp.f32 %v1040_v55 }
 0x37d   : > { %v1043_v1 = vpop.xlane.xlu1 %1042  ;;  %v824_v21 = vpop.xlane.xlu0 %823 }
 0x37e   : > { %2788 = vrcp.f32 %v1043_v1  ;;  %v894_v40 = vsub.f32 %v3513_v45, %v824_v21  ;;  %v895_v28 = vsub.f32 %v3515_v48, %v824_v21 }
 0x380   : > { %v1006_v10 = vmul.f32 1.442695, %v894_v40  ;;  %v1008_v24 = vmul.f32 1.442695, %v895_v28 }
 0x381   : > { %v1046_v32 = vpop.xlane.xlu0 %1045  ;;  %v827_v19 = vpop.xlane.xlu1 %826 }
 0x382   : > { %2790 = vpow2.f32 %v1006_v10  ;;  %v896_v9 = vsub.f32 %v3519_v54, %v827_v19  ;;  %v897_v8 = vsub.f32 %v3521_v57, %v827_v19  ;;  %v4874_v19 = vld [vmem:[#allocation44_spill] sm:$0xff] }
 0x383   : > { %2792 = vpow2.f32 %v1008_v24 }
 0x384   : > { %2794 = vrcp.f32 %v1046_v32  ;;  %v1010_v7 = vmul.f32 1.442695, %v896_v9  ;;  %v1012_v55 = vmul.f32 1.442695, %v897_v8  ;;  %v2787_v1 = vpop.eup %2786  ;;  %v4875_v8 = vld [vmem:[#allocation39_spill] sm:$0xff]  ;;  %v4876_v9 = vld [vmem:[#allocation42_spill] sm:$0xff] }
 0x385   : > { %v1049_v43 = vpop.xlane.xlu1 %1048  ;;  %v830_v27 = vpop.xlane.xlu0 %829  ;;  %v1167_v57 = vmul.f32 %v2787_v1, %v3621_v44  ;;  %v1166_v32 = vmul.f32 %v2787_v1, %v4875_v8 }
 0x386   : > { %2796 = vpow2.f32 %v1010_v7  ;;  %v898_v45 = vsub.f32 %v3525_v63, %v830_v27  ;;  %v899_v48 = vsub.f32 %v3527_v3, %v830_v27 }
 0x387   : > { %2798 = vpow2.f32 %v1012_v55 }
 0x388   : > { %v2789_v40 = vpop.eup %2788  ;;  %2800 = vrcp.f32 %v1049_v43  ;;  %v1014_v21 = vmul.f32 1.442695, %v898_v45  ;;  %v1016_v28 = vmul.f32 1.442695, %v899_v48 }
 0x389   : > { %v1052_v54 = vpop.xlane.xlu0 %1051  ;;  %v1169_v24 = vmul.f32 %v2789_v40, %v4874_v19  ;;  %v1168_v25 = vmul.f32 %v2789_v40, %v4876_v9 }
 0x38a   : > { %v833_v10 = vpop.xlane.xlu1 %832  ;;  %2802 = vpow2.f32 %v1014_v21 }
 0x38b   : > { %v900_v63 = vsub.f32 %v3531_v11, %v833_v10  ;;  %v901_v3 = vsub.f32 %v3533_v17, %v833_v10  ;;  %2804 = vpow2.f32 %v1016_v28  ;;  %v2515_v27 = vpack.c.bf16 %v1169_v24, %v1167_v57  ;;  %v4877_v24 = vld [vmem:[#allocation47_spill] sm:$0xff] }
 0x38c   : > { %v2517_v43 = vpack.c.bf16 %v1168_v25, %v1166_v32  ;;  %v4034_v7 = vpop.eup %2790  ;;  %2806 = vrcp.f32 %v1052_v54 }
 0x38d   : > { %v1018_v55 = vmul.f32 1.442695, %v900_v63  ;;  %v1020_v45 = vmul.f32 1.442695, %v901_v3  ;;  %v4036_v44 = vpop.eup %2792  ;;  %2516 = vmatprep.subr.bf16.mxu0 %v2515_v27  ;;  %v836_v1 = vpop.xlane.xlu0 %835  ;;  %v4878_v63 = vld [vmem:[#allocation49_spill] sm:$0xff]  ;;  %v4879_v27 = vld [vmem:[#allocation46_spill] sm:$0xff] }
 0x38e   : > { %v1055_v48 = vpop.xlane.xlu1 %1054  ;;  %v2795_v19 = vpop.eup %2794  ;;  %v902_v40 = vsub.f32 %v3537_v30, %v836_v1  ;;  %v903_v11 = vsub.f32 %v3539_v37, %v836_v1  ;;  %2518 = vmatpush1.bf16.xpose.msra.mxu0 %v2517_v43  ;;  %v1110_v17 = vadd.f32 %v4036_v44, %v4034_v7 }
 0x38f   : > { %2808 = vpow2.f32 %v1018_v55  ;;  %v1171_v8 = vmul.f32 %v2795_v19, %v4877_v24  ;;  %v1170_v43 = vmul.f32 %v2795_v19, %v4879_v27  ;;  %v4880_v55 = vld [vmem:[#allocation48_spill] sm:$0xff] }
 0x390   : > { %2810 = vpow2.f32 %v1020_v45  ;;  %v4042_v25 = vpop.eup %2796  ;;  %v1022_v21 = vmul.f32 1.442695, %v902_v40  ;;  %v1024_v28 = vmul.f32 1.442695, %v903_v11  ;;  %1111 = vadd.xlane.f32.xlu0 %v1110_v17 }
 0x391   : > { %2812 = vrcp.f32 %v1055_v48  ;;  %v4044_v54 = vpop.eup %2798  ;;  %v1058_v10 = vpop.xlane.xlu0 %1057 }
 0x392   : > { %v839_v57 = vpop.xlane.xlu1 %838  ;;  %v2801_v30 = vpop.eup %2800  ;;  %2814 = vpow2.f32 %v1022_v21  ;;  %v1113_v9 = vadd.f32 %v4044_v54, %v4042_v25 }
 0x393   : > { %v904_v37 = vsub.f32 %v3543_v0, %v839_v57  ;;  %v905_v32 = vsub.f32 %v3545_v60, %v839_v57  ;;  %2816 = vpow2.f32 %v1024_v28  ;;  %v1173_v3 = vmul.f32 %v2801_v30, %v4878_v63  ;;  %v4884_v63 = vld [vmem:[#allocation51_spill] sm:$0xff] }
 0x394   : > { %v1172_v45 = vmul.f32 %v2801_v30, %v4880_v55  ;;  %v4054_v48 = vpop.eup %2802  ;;  %2818 = vrcp.f32 %v1058_v10  ;;  %1114 = vadd.xlane.f32.xlu1 %v1113_v9  ;;  %v4881_v0 = vmax.f32 %v3757_v35, %v3761_v47  ;;  %v4883_v9 = vmax.f32 %v3774_v62, %v3778_v50 }
 0x395   : > { %v1026_v1 = vmul.f32 1.442695, %v904_v37  ;;  %v1028_v40 = vmul.f32 1.442695, %v905_v32  ;;  %v4059_v60 = vpop.eup %2804  ;;  %v2519_v11 = vpack.c.bf16 %v1173_v3, %v1171_v8  ;;  %v842_v21 = vpop.xlane.xlu0 %841 }
 0x396   : > { %1767 = vmax.xlane.f32.xlu0 %v4881_v0  ;;  %v1061_v17 = vpop.xlane.xlu1 %1060  ;;  %v2521_v28 = vpack.c.bf16 %v1172_v45, %v1170_v43  ;;  %v2807_v57 = vpop.eup %2806  ;;  %v906_v19 = vsub.f32 %v3549_v51, %v842_v21  ;;  %v907_v24 = vsub.f32 %v3551_v41, %v842_v21  ;;  %v1116_v10 = vadd.f32 %v4059_v60, %v4054_v48  ;;  %v4886_v0 = vld [vmem:[#allocation50_spill] sm:$0xff] }
 0x397   : > { %2820 = vpow2.f32 %v1026_v1  ;;  %2520 = vmatprep.subr.bf16.mxu0 %v2519_v11  ;;  %v1175_v3 = vmul.f32 %v2807_v57, %v4884_v63  ;;  %v4885_v1 = vld [vmem:[#allocation55_spill] sm:$0xff]  ;;  %v1174_v11 = vmul.f32 %v2807_v57, %v4886_v0  ;;  %v4896_v0 = vld [vmem:[#allocation74_spill] sm:$0xff] }
 0x398   : > { %2822 = vpow2.f32 %v1028_v40  ;;  %v1030_v37 = vmul.f32 1.442695, %v906_v19  ;;  %v1032_v32 = vmul.f32 1.442695, %v907_v24  ;;  %2522 = vmatpush1.bf16.xpose.msra.mxu0 %v2521_v28  ;;  %1770 = vmax.xlane.f32.xlu1 %v4883_v9  ;;  %v4891_v57 = vld [vmem:[#allocation23_spill] sm:$0xff] }
 0x399   : > { %v4065_v30 = vpop.eup %2808  ;;  %2824 = vrcp.f32 %v1061_v17  ;;  %v1064_v51 = vpop.xlane.xlu0 %1063  ;;  %v4887_v17 = vld [vmem:[#allocation53_spill] sm:$0xff] }
 0x39a   : > { %4882 = vst [vmem:[#allocation44_spill] sm:$0xff] %v4065_v30  ;;  %1117 = vadd.xlane.f32.xlu0 %v1116_v10  ;;  %v4067_v8 = vpop.eup %2810  ;;  %v845_v41 = vpop.xlane.xlu1 %844  ;;  %2826 = vpow2.f32 %v1030_v37 }
 0x39b   : > { %v2813_v27 = vpop.eup %2812  ;;  %v908_v43 = vsub.f32 %v3555_v39, %v845_v41  ;;  %v909_v55 = vsub.f32 %v3557_v34, %v845_v41  ;;  %v1119_v45 = vadd.f32 %v4067_v8, %v4065_v30  ;;  %2828 = vpow2.f32 %v1032_v32 }
 0x39c   : > { %v1177_v40 = vmul.f32 %v2813_v27, %v4885_v1  ;;  %v1176_v21 = vmul.f32 %v2813_v27, %v4887_v17  ;;  %v4080_v28 = vpop.eup %2814  ;;  %2830 = vrcp.f32 %v1064_v51  ;;  %v4889_v39 = vmax.f32 %v3791_v13, %v3795_v53  ;;  %v4892_v27 = vld [vmem:[#allocation24_spill] sm:$0xff] }
 0x39d   : > { %4888 = vst [vmem:[#allocation39_spill] sm:$0xff] %v4080_v28  ;;  %v1034_v19 = vmul.f32 1.442695, %v908_v43  ;;  %v1036_v24 = vmul.f32 1.442695, %v909_v55  ;;  %v4085_v34 = vpop.eup %2816  ;;  %1120 = vadd.xlane.f32.xlu1 %v1119_v45  ;;  %v1720_v32 = vpop.xlane.xlu0 %1719 }
 0x39e   : > { %1773 = vmax.xlane.f32.xlu0 %v4889_v39  ;;  %4890 = vst [vmem:[#allocation42_spill] sm:$0xff] %v4085_v34  ;;  %v2523_v10 = vpack.c.bf16 %v1177_v40, %v1175_v3  ;;  %v1067_v37 = vpop.xlane.xlu1 %1066  ;;  %v2525_v9 = vpack.c.bf16 %v1176_v21, %v1174_v11  ;;  %v2819_v41 = vpop.eup %2818  ;;  %v1814_v63 = vsub.f32 %v4891_v57, %v1720_v32  ;;  %v4895_v40 = vld [vmem:[#allocation72_spill] sm:$0xff]  ;;  %v4900_v57 = vld [vmem:[#allocation26_spill] sm:$0xff] }
 0x39f   : > { %2832 = vpow2.f32 %v1034_v19  ;;  %v1815_v1 = vsub.f32 %v4892_v27, %v1720_v32  ;;  %v1122_v51 = vadd.f32 %v4085_v34, %v4080_v28  ;;  %v4897_v11 = vmax.f32 %v4895_v40, %v4896_v0  ;;  %v4898_v19 = vld [vmem:[#allocation59_spill] sm:$0xff]  ;;  %v4903_v28 = vld [vmem:[#allocation61_spill] sm:$0xff] }
 0x3a0   : > { %2834 = vpow2.f32 %v1036_v24  ;;  %2524 = vmatprep.subr.bf16.mxu0 %v2523_v10  ;;  %v1878_v55 = vmul.f32 1.442695, %v1814_v63  ;;  %v1179_v39 = vmul.f32 %v2819_v41, %v4898_v19  ;;  %v4899_v24 = vld [vmem:[#allocation25_spill] sm:$0xff]  ;;  %v4901_v63 = vld [vmem:[#allocation63_spill] sm:$0xff] }
 0x3a1   : > { %v4091_v43 = vpop.eup %2820  ;;  %2836 = vrcp.f32 %v1067_v37  ;;  %v1880_v45 = vmul.f32 1.442695, %v1815_v1  ;;  %2526 = vmatpush1.bf16.xpose.msra.mxu0 %v2525_v9  ;;  %1776 = vmax.xlane.f32.xlu1 %v4897_v11  ;;  %v1070_v17 = vpop.xlane.xlu0 %1069  ;;  %v4902_v1 = vld [vmem:[#allocation57_spill] sm:$0xff] }
 0x3a2   : > { %4893 = vst [vmem:[#allocation47_spill] sm:$0xff] %v4091_v43  ;;  %1123 = vadd.xlane.f32.xlu0 %v1122_v51  ;;  %v4093_v3 = vpop.eup %2822  ;;  %v1723_v21 = vpop.xlane.xlu1 %1722  ;;  %2838 = vpow2.f32 %v1878_v55  ;;  %v1178_v51 = vmul.f32 %v2819_v41, %v4902_v1  ;;  %v4905_v55 = vmax.f32 %v3825_v18, %v3829_v59  ;;  %v4907_v41 = vld [vmem:[#allocation27_spill] sm:$0xff] }
 0x3a3   : > { %4894 = vst [vmem:[#allocation49_spill] sm:$0xff] %v4093_v3  ;;  %v2825_v32 = vpop.eup %2824  ;;  %v1816_v10 = vsub.f32 %v4899_v24, %v1723_v21  ;;  %v1817_v37 = vsub.f32 %v4900_v57, %v1723_v21  ;;  %v1125_v9 = vadd.f32 %v4093_v3, %v4091_v43  ;;  %2840 = vpow2.f32 %v1880_v45 }
 0x3a4   : > { %v1181_v27 = vmul.f32 %v2825_v32, %v4901_v63  ;;  %v1180_v11 = vmul.f32 %v2825_v32, %v4903_v28  ;;  %v4106_v34 = vpop.eup %2826  ;;  %2842 = vrcp.f32 %v1070_v17  ;;  %v4908_v32 = vld [vmem:[#allocation28_spill] sm:$0xff] }
 0x3a5   : > { %4904 = vst [vmem:[#allocation46_spill] sm:$0xff] %v4106_v34  ;;  %v1882_v19 = vmul.f32 1.442695, %v1816_v10  ;;  %v1884_v30 = vmul.f32 1.442695, %v1817_v37  ;;  %v4111_v21 = vpop.eup %2828  ;;  %1126 = vadd.xlane.f32.xlu1 %v1125_v9  ;;  %v1726_v57 = vpop.xlane.xlu0 %1725 }
 0x3a6   : > { %1779 = vmax.xlane.f32.xlu0 %v4905_v55  ;;  %4906 = vst [vmem:[#allocation48_spill] sm:$0xff] %v4111_v21  ;;  %v2527_v24 = vpack.c.bf16 %v1181_v27, %v1179_v39  ;;  %v1073_v45 = vpop.xlane.xlu1 %1072  ;;  %v2529_v63 = vpack.c.bf16 %v1180_v11, %v1178_v51  ;;  %v2831_v43 = vpop.eup %2830  ;;  %v1818_v28 = vsub.f32 %v4907_v41, %v1726_v57  ;;  %v4914_v41 = vld [vmem:[#allocation30_spill] sm:$0xff] }
 0x3a7   : > { %2844 = vpow2.f32 %v1882_v19  ;;  %v1819_v1 = vsub.f32 %v4908_v32, %v1726_v57  ;;  %v1128_v17 = vadd.f32 %v4111_v21, %v4106_v34  ;;  %v4911_v27 = vmax.f32 %v3842_v31, %v3846_v38  ;;  %v4912_v19 = vld [vmem:[#allocation66_spill] sm:$0xff]  ;;  %v4917_v34 = vld [vmem:[#allocation67_spill] sm:$0xff] }
 0x3a8   : > { %2846 = vpow2.f32 %v1884_v30  ;;  %2528 = vmatprep.subr.bf16.mxu0 %v2527_v24  ;;  %v1886_v37 = vmul.f32 1.442695, %v1818_v28  ;;  %v1183_v55 = vmul.f32 %v2831_v43, %v4912_v19  ;;  %v4913_v30 = vld [vmem:[#allocation29_spill] sm:$0xff]  ;;  %v4915_v28 = vld [vmem:[#allocation68_spill] sm:$0xff] }
 0x3a9   : > { %v4117_v10 = vpop.eup %2832  ;;  %2848 = vrcp.f32 %v1073_v45  ;;  %v1888_v9 = vmul.f32 1.442695, %v1819_v1  ;;  %2530 = vmatpush1.bf16.xpose.msra.mxu0 %v2529_v63  ;;  %1782 = vmax.xlane.f32.xlu1 %v4911_v27  ;;  %v1076_v51 = vpop.xlane.xlu0 %1075  ;;  %v4916_v1 = vld [vmem:[#allocation65_spill] sm:$0xff] }
 0x3aa   : > { %4909 = vst [vmem:[#allocation51_spill] sm:$0xff] %v4117_v10  ;;  %1129 = vadd.xlane.f32.xlu0 %v1128_v17  ;;  %v4119_v39 = vpop.eup %2834  ;;  %v1729_v11 = vpop.xlane.xlu1 %1728  ;;  %2850 = vpow2.f32 %v1886_v37  ;;  %v1182_v17 = vmul.f32 %v2831_v43, %v4916_v1  ;;  %v4919_v37 = vld [vmem:[#allocation75_spill] sm:$0xff] }
 0x3ab   : > { %4910 = vst [vmem:[#allocation55_spill] sm:$0xff] %v4119_v39  ;;  %v2837_v57 = vpop.eup %2836  ;;  %v1820_v24 = vsub.f32 %v4913_v30, %v1729_v11  ;;  %v1821_v45 = vsub.f32 %v4914_v41, %v1729_v11  ;;  %v1131_v63 = vadd.f32 %v4119_v39, %v4117_v10  ;;  %2852 = vpow2.f32 %v1888_v9  ;;  %v4922_v43 = vld [vmem:[#allocation31_spill] sm:$0xff] }
 0x3ac   : > { %v1185_v32 = vmul.f32 %v2837_v57, %v4915_v28  ;;  %v1184_v27 = vmul.f32 %v2837_v57, %v4917_v34  ;;  %v4132_v21 = vpop.eup %2838  ;;  %2854 = vrcp.f32 %v1076_v51  ;;  %v4920_v30 = vmax.f32 %v3859_v20, %v4919_v37  ;;  %v4923_v57 = vld [vmem:[#allocation32_spill] sm:$0xff] }
 0x3ad   : > { %4918 = vst [vmem:[#allocation50_spill] sm:$0xff] %v4132_v21  ;;  %v1890_v19 = vmul.f32 1.442695, %v1820_v24  ;;  %v1892_v3 = vmul.f32 1.442695, %v1821_v45  ;;  %v4137_v11 = vpop.eup %2840  ;;  %1132 = vadd.xlane.f32.xlu1 %v1131_v63  ;;  %v1732_v10 = vpop.xlane.xlu0 %1731 }
 0x3ae   : > { %1785 = vmax.xlane.f32.xlu0 %v4920_v30  ;;  %4921 = vst [vmem:[#allocation53_spill] sm:$0xff] %v4137_v11  ;;  %v2531_v41 = vpack.c.bf16 %v1185_v32, %v1183_v55  ;;  %v1079_v9 = vpop.xlane.xlu1 %1078  ;;  %v2533_v28 = vpack.c.bf16 %v1184_v27, %v1182_v17  ;;  %v2843_v39 = vpop.eup %2842  ;;  %v1822_v34 = vsub.f32 %v4922_v43, %v1732_v10  ;;  %v4926_v32 = vld [vmem:[#allocation77_spill] sm:$0xff] }
 0x3af   : > { %2856 = vpow2.f32 %v1890_v19  ;;  %v1823_v1 = vsub.f32 %v4923_v57, %v1732_v10  ;;  %v2006_v51 = vadd.f32 %v4137_v11, %v4132_v21  ;;  %v4927_v17 = vmax.f32 %v3876_v46, %v4926_v32  ;;  %v4928_v19 = vld [vmem:[#allocation70_spill] sm:$0xff]  ;;  %v4933_v11 = vld [vmem:[#allocation71_spill] sm:$0xff] }
 0x3b0   : > { %2858 = vpow2.f32 %v1892_v3  ;;  %2532 = vmatprep.subr.bf16.mxu0 %v2531_v41  ;;  %v1894_v45 = vmul.f32 1.442695, %v1822_v34  ;;  %v1187_v30 = vmul.f32 %v2843_v39, %v4928_v19  ;;  %v4929_v3 = vld [vmem:[#allocation33_spill] sm:$0xff]  ;;  %v4930_v57 = vld [vmem:[#allocation34_spill] sm:$0xff] }
 0x3b1   : > { %v4143_v24 = vpop.eup %2844  ;;  %2860 = vrcp.f32 %v1079_v9  ;;  %v1896_v63 = vmul.f32 1.442695, %v1823_v1  ;;  %2534 = vmatpush1.bf16.xpose.msra.mxu0 %v2533_v28  ;;  %1788 = vmax.xlane.f32.xlu1 %v4927_v17  ;;  %v1082_v27 = vpop.xlane.xlu0 %1081  ;;  %v4931_v34 = vld [vmem:[#allocation73_spill] sm:$0xff] }
 0x3b2   : > { %4924 = vst [vmem:[#allocation23_spill] sm:$0xff] %v4143_v24  ;;  %2007 = vadd.xlane.f32.xlu0 %v2006_v51  ;;  %v4145_v55 = vpop.eup %2846  ;;  %v1735_v10 = vpop.xlane.xlu1 %1734  ;;  %2862 = vpow2.f32 %v1894_v45  ;;  %v4932_v51 = vld [vmem:[#allocation69_spill] sm:$0xff]  ;;  %v4935_v45 = vmax.f32 %v3893_v49, %v3897_v58 }
 0x3b3   : > { %4925 = vst [vmem:[#allocation24_spill] sm:$0xff] %v4145_v55  ;;  %v2849_v43 = vpop.eup %2848  ;;  %v1824_v41 = vsub.f32 %v4929_v3, %v1735_v10  ;;  %v1825_v9 = vsub.f32 %v4930_v57, %v1735_v10  ;;  %v2009_v28 = vadd.f32 %v4145_v55, %v4143_v24  ;;  %2864 = vpow2.f32 %v1896_v63 }
 0x3b4   : > { %v1189_v1 = vmul.f32 %v2849_v43, %v4931_v34  ;;  %v1186_v21 = vmul.f32 %v2843_v39, %v4932_v51  ;;  %v1188_v17 = vmul.f32 %v2849_v43, %v4933_v11  ;;  %v4158_v32 = vpop.eup %2850  ;;  %2866 = vrcp.f32 %v1082_v27  ;;  %v4937_v39 = vld [vmem:[#allocation35_spill] sm:$0xff]  ;;  %v4938_v43 = vld [vmem:[#allocation36_spill] sm:$0xff] }
 0x3b5   : > { %4934 = vst [vmem:[#allocation72_spill] sm:$0xff] %v4158_v32  ;;  %v1898_v19 = vmul.f32 1.442695, %v1824_v41  ;;  %v1900_v46 = vmul.f32 1.442695, %v1825_v9  ;;  %v4163_v10 = vpop.eup %2852  ;;  %2010 = vadd.xlane.f32.xlu1 %v2009_v28  ;;  %v1738_v57 = vpop.xlane.xlu0 %1737 }
 0x3b6   : > { %1791 = vmax.xlane.f32.xlu0 %v4935_v45  ;;  %4936 = vst [vmem:[#allocation74_spill] sm:$0xff] %v4163_v10  ;;  %v2535_v3 = vpack.c.bf16 %v1189_v1, %v1187_v30  ;;  %v1085_v63 = vpop.xlane.xlu1 %1084  ;;  %v2537_v34 = vpack.c.bf16 %v1188_v17, %v1186_v21  ;;  %v2855_v24 = vpop.eup %2854  ;;  %v1826_v11 = vsub.f32 %v4937_v39, %v1738_v57  ;;  %v4944_v39 = vld [vmem:[#allocation38_spill] sm:$0xff] }
 0x3b7   : > { %2868 = vpow2.f32 %v1898_v19  ;;  %v1827_v51 = vsub.f32 %v4938_v43, %v1738_v57  ;;  %v2012_v27 = vadd.f32 %v4163_v10, %v4158_v32  ;;  %v4941_v21 = vmax.f32 %v3910_v52, %v3914_v36  ;;  %v4942_v19 = vld [vmem:[#allocation6_spill] sm:$0xff]  ;;  %v4947_v32 = vld [vmem:[#allocation7_spill] sm:$0xff] }
 0x3b8   : > { %2870 = vpow2.f32 %v1900_v46  ;;  %2536 = vmatprep.subr.bf16.mxu0 %v2535_v3  ;;  %v1902_v9 = vmul.f32 1.442695, %v1826_v11  ;;  %v1191_v45 = vmul.f32 %v2855_v24, %v4942_v19  ;;  %v4943_v46 = vld [vmem:[#allocation37_spill] sm:$0xff]  ;;  %v4945_v11 = vld [vmem:[#allocation8_spill] sm:$0xff] }
 0x3b9   : > { %v4169_v41 = vpop.eup %2856  ;;  %2872 = vrcp.f32 %v1085_v63  ;;  %v1904_v28 = vmul.f32 1.442695, %v1827_v51  ;;  %2538 = vmatpush1.bf16.xpose.msra.mxu0 %v2537_v34  ;;  %1794 = vmax.xlane.f32.xlu1 %v4941_v21  ;;  %v1088_v1 = vpop.xlane.xlu0 %1087  ;;  %v4946_v51 = vld [vmem:[#allocation5_spill] sm:$0xff] }
 0x3ba   : > { %4939 = vst [vmem:[#allocation59_spill] sm:$0xff] %v4169_v41  ;;  %2013 = vadd.xlane.f32.xlu0 %v2012_v27  ;;  %v4171_v30 = vpop.eup %2858  ;;  %v1741_v17 = vpop.xlane.xlu1 %1740  ;;  %2874 = vpow2.f32 %v1902_v9  ;;  %v1190_v27 = vmul.f32 %v2855_v24, %v4946_v51  ;;  %v4949_v9 = vmax.f32 %v3927_v33, %v3931_v42  ;;  %v4951_v24 = vld [vmem:[#allocation40_spill] sm:$0xff] }
 0x3bb   : > { %4940 = vst [vmem:[#allocation25_spill] sm:$0xff] %v4171_v30  ;;  %v2861_v57 = vpop.eup %2860  ;;  %v1828_v3 = vsub.f32 %v4943_v46, %v1741_v17  ;;  %v1829_v63 = vsub.f32 %v4944_v39, %v1741_v17  ;;  %v2015_v34 = vadd.f32 %v4171_v30, %v4169_v41  ;;  %2876 = vpow2.f32 %v1904_v28 }
 0x3bc   : > { %v1193_v43 = vmul.f32 %v2861_v57, %v4945_v11  ;;  %v1192_v21 = vmul.f32 %v2861_v57, %v4947_v32  ;;  %v4184_v10 = vpop.eup %2862  ;;  %2878 = vrcp.f32 %v1088_v1  ;;  %v4952_v57 = vld [vmem:[#allocation41_spill] sm:$0xff] }
 0x3bd   : > { %4948 = vst [vmem:[#allocation26_spill] sm:$0xff] %v4184_v10  ;;  %v1906_v19 = vmul.f32 1.442695, %v1828_v3  ;;  %v1908_v55 = vmul.f32 1.442695, %v1829_v63  ;;  %v4189_v17 = vpop.eup %2864  ;;  %2016 = vadd.xlane.f32.xlu1 %v2015_v34  ;;  %v1744_v39 = vpop.xlane.xlu0 %1743  ;;  %v202_v3 = vld [vmem:[%s4582_s1 + $0x28] sm:$0xff] }
 0x3be   : > { %1797 = vmax.xlane.f32.xlu0 %v4949_v9  ;;  %4950 = vst [vmem:[#allocation63_spill] sm:$0xff] %v4189_v17  ;;  %v2539_v46 = vpack.c.bf16 %v1193_v43, %v1191_v45  ;;  %v1091_v28 = vpop.xlane.xlu1 %1090  ;;  %v2541_v11 = vpack.c.bf16 %v1192_v21, %v1190_v27  ;;  %v2867_v41 = vpop.eup %2866  ;;  %v1830_v32 = vsub.f32 %v4951_v24, %v1744_v39  ;;  %v4957_v24 = vld [vmem:[#allocation45_spill] sm:$0xff] }
 0x3bf   : > { %2880 = vpow2.f32 %v1906_v19  ;;  %v1831_v51 = vsub.f32 %v4952_v57, %v1744_v39  ;;  %v2018_v1 = vadd.f32 %v4189_v17, %v4184_v10  ;;  %v4954_v27 = vmax.f32 %v3944_v15, %v3948_v22  ;;  %v4955_v19 = vld [vmem:[#allocation10_spill] sm:$0xff]  ;;  %2442 = vmatmul.mubr.msk.f32.gmra.mrb[10].mxu0 %vm207_vm1, %v202_v3  ;;  %v4956_v39 = vld [vmem:[#allocation43_spill] sm:$0xff]  ;;  %v4958_v57 = vld [vmem:[#allocation76_spill] sm:$0xff] }
 0x3c0   : > { %2882 = vpow2.f32 %v1908_v55  ;;  %2540 = vmatprep.subr.bf16.mxu0 %v2539_v46  ;;  %v1910_v45 = vmul.f32 1.442695, %v1830_v32  ;;  %v1195_v9 = vmul.f32 %v2867_v41, %v4955_v19  ;;  %v4960_v10 = vld [vmem:[#allocation11_spill] sm:$0xff] }
 0x3c1   : > { %v4198_v63 = vpop.eup %2868  ;;  %2884 = vrcp.f32 %v1091_v28  ;;  %v1912_v34 = vmul.f32 1.442695, %v1831_v51  ;;  %2542 = vmatpush1.bf16.xpose.msra.mxu0 %v2541_v11  ;;  %1800 = vmax.xlane.f32.xlu1 %v4954_v27  ;;  %v1094_v21 = vpop.xlane.xlu0 %1093 }
 0x3c2   : > { %4953 = vst [vmem:[#allocation57_spill] sm:$0xff] %v4198_v63  ;;  %2019 = vadd.xlane.f32.xlu0 %v2018_v1  ;;  %v4200_v43 = vpop.eup %2870  ;;  %v1747_v55 = vpop.xlane.xlu1 %1746  ;;  %2886 = vpow2.f32 %v1910_v45  ;;  %v4959_v1 = vld [vmem:[#allocation9_spill] sm:$0xff]  ;;  %v4962_v45 = vmax.f32 %v3961_v26, %v3965_v56 }
 0x3c3   : > { %v2873_v46 = vpop.eup %2872  ;;  %v1832_v28 = vsub.f32 %v4956_v39, %v1747_v55  ;;  %v1833_v32 = vsub.f32 %v4957_v24, %v1747_v55  ;;  %v2021_v11 = vadd.f32 %v4200_v43, %v4198_v63  ;;  %2888 = vpow2.f32 %v1912_v34 }
 0x3c4   : > { %v1197_v51 = vmul.f32 %v2873_v46, %v4958_v57  ;;  %v1194_v27 = vmul.f32 %v2867_v41, %v4959_v1  ;;  %v1196_v17 = vmul.f32 %v2873_v46, %v4960_v10  ;;  %v4214_v30 = vpop.eup %2874  ;;  %2890 = vrcp.f32 %v1094_v21 }
 0x3c5   : > { %4961 = vst [vmem:[#allocation61_spill] sm:$0xff] %v4214_v30  ;;  %v1914_v3 = vmul.f32 1.442695, %v1832_v28  ;;  %v1916_v19 = vmul.f32 1.442695, %v1833_v32  ;;  %v4219_v55 = vpop.eup %2876  ;;  %2022 = vadd.xlane.f32.xlu1 %v2021_v11  ;;  %v1750_v24 = vpop.xlane.xlu0 %1749  ;;  %v4965_v11 = vld [vmem:[#allocation14_spill] sm:$0xff] }
 0x3c6   : > { %1803 = vmax.xlane.f32.xlu0 %v4962_v45  ;;  %v2543_v39 = vpack.c.bf16 %v1197_v51, %v1195_v9  ;;  %v1097_v34 = vpop.xlane.xlu1 %1096  ;;  %v2545_v57 = vpack.c.bf16 %v1196_v17, %v1194_v27  ;;  %v2879_v63 = vpop.eup %2878  ;;  %v1834_v10 = vsub.f32 %v3650_v6, %v1750_v24  ;;  %v1835_v41 = vsub.f32 %v3654_v23, %v1750_v24  ;;  %v4966_v45 = vld [vmem:[#allocation16_spill] sm:$0xff] }
 0x3c7   : > { %2892 = vpow2.f32 %v1914_v3  ;;  %v2024_v21 = vadd.f32 %v4219_v55, %v4214_v30  ;;  %v4964_v17 = vmax.f32 %v3976_v61, %v3980_v4  ;;  %v1199_v51 = vmul.f32 %v2879_v63, %v4965_v11 }
 0x3c8   : > { %2894 = vpow2.f32 %v1916_v19  ;;  %2544 = vmatprep.subr.bf16.mxu0 %v2543_v39  ;;  %v1918_v28 = vmul.f32 1.442695, %v1834_v10  ;;  %v1920_v32 = vmul.f32 1.442695, %v1835_v41 }
 0x3c9   : > { %v4225_v46 = vpop.eup %2880  ;;  %2896 = vrcp.f32 %v1097_v34  ;;  %2546 = vmatpush1.bf16.xpose.msra.mxu0 %v2545_v57  ;;  %1806 = vmax.xlane.f32.xlu1 %v4964_v17  ;;  %v1100_v6 = vpop.xlane.xlu0 %1099  ;;  %v4967_v34 = vld [vmem:[#allocation13_spill] sm:$0xff]  ;;  %v4968_v57 = vld [vmem:[#allocation15_spill] sm:$0xff] }
 0x3ca   : > { %4963 = vst [vmem:[#allocation27_spill] sm:$0xff] %v4225_v46  ;;  %2025 = vadd.xlane.f32.xlu0 %v2024_v21  ;;  %v4227_v9 = vpop.eup %2882  ;;  %v1753_v23 = vpop.xlane.xlu1 %1752  ;;  %2898 = vpow2.f32 %v1918_v28  ;;  %v1198_v24 = vmul.f32 %v2879_v63, %v4967_v34 }
 0x3cb   : > { %v2885_v1 = vpop.eup %2884  ;;  %v1836_v27 = vsub.f32 %v3667_v14, %v1753_v23  ;;  %v1837_v3 = vsub.f32 %v3671_v29, %v1753_v23  ;;  %v2027_v19 = vadd.f32 %v4227_v9, %v4225_v46  ;;  %2900 = vpow2.f32 %v1920_v32 }
 0x3cc   : > { %v1201_v39 = vmul.f32 %v2885_v1, %v4966_v45  ;;  %v1200_v10 = vmul.f32 %v2885_v1, %v4968_v57  ;;  %v4240_v41 = vpop.eup %2886  ;;  %2902 = vrcp.f32 %v1100_v6  ;;  %v4970_v14 = vmax.f32 %v3991_v16, %v3995_v12  ;;  %v4972_v1 = vld [vmem:[#allocation52_spill] sm:$0xff] }
 0x3cd   : > { %4969 = vst [vmem:[#allocation28_spill] sm:$0xff] %v4240_v41  ;;  %v1922_v21 = vmul.f32 1.442695, %v1836_v27  ;;  %v1924_v17 = vmul.f32 1.442695, %v1837_v3  ;;  %v4245_v29 = vpop.eup %2888  ;;  %2028 = vadd.xlane.f32.xlu1 %v2027_v19  ;;  %v1756_v23 = vpop.xlane.xlu0 %1755 }
 0x3ce   : > { %1809 = vmax.xlane.f32.xlu0 %v4970_v14  ;;  %4971 = vst [vmem:[#allocation66_spill] sm:$0xff] %v4245_v29  ;;  %v2547_v28 = vpack.c.bf16 %v1201_v39, %v1199_v51  ;;  %v1103_v32 = vpop.xlane.xlu1 %1102  ;;  %v2549_v11 = vpack.c.bf16 %v1200_v10, %v1198_v24  ;;  %v2891_v45 = vpop.eup %2890  ;;  %v1838_v63 = vsub.f32 %v3684_v5, %v1756_v23  ;;  %v4975_v39 = vld [vmem:[#allocation84_spill] sm:$0xff]  ;;  %v4977_v10 = vld [vmem:[#allocation18_spill] sm:$0xff] }
 0x3cf   : > { %2904 = vpow2.f32 %v1922_v21  ;;  %v1839_v34 = vsub.f32 %v4972_v1, %v1756_v23  ;;  %v2030_v6 = vadd.f32 %v4245_v29, %v4240_v41  ;;  %v4976_v24 = vmax.f32 %v4006_v2, %v4975_v39  ;;  %v4979_v23 = vld [vmem:[#allocation56_spill] sm:$0xff]  ;;  %v4982_v41 = vld [vmem:[#allocation19_spill] sm:$0xff] }
 0x3d0   : > { %2906 = vpow2.f32 %v1924_v17  ;;  %2548 = vmatprep.subr.bf16.mxu0 %v2547_v28  ;;  %v1926_v3 = vmul.f32 1.442695, %v1838_v63  ;;  %v1203_v21 = vmul.f32 %v2891_v45, %v4977_v10  ;;  %v4978_v17 = vld [vmem:[#allocation54_spill] sm:$0xff]  ;;  %v4263_v63 = vpop.f32.mrb[8].mxu0  ;;  %v4980_v1 = vld [vmem:[#allocation20_spill] sm:$0xff] }
 0x3d1   : > { %v4251_v27 = vpop.eup %2892  ;;  %2908 = vrcp.f32 %v1103_v32  ;;  %v1928_v19 = vmul.f32 1.442695, %v1839_v34  ;;  %2550 = vmatpush1.bf16.xpose.msra.mxu0 %v2549_v11  ;;  %1812 = vmax.xlane.f32.xlu1 %v4976_v24  ;;  %v1106_v5 = vpop.xlane.xlu0 %1105 }
 0x3d2   : > { %4973 = vst [vmem:[#allocation29_spill] sm:$0xff] %v4251_v27  ;;  %2031 = vadd.xlane.f32.xlu0 %v2030_v6  ;;  %v4253_v51 = vpop.eup %2894  ;;  %v1759_v57 = vpop.xlane.xlu1 %1758  ;;  %2910 = vpow2.f32 %v1926_v3  ;;  %v4981_v6 = vld [vmem:[#allocation17_spill] sm:$0xff] }
 0x3d3   : > { %4974 = vst [vmem:[#allocation30_spill] sm:$0xff] %v4253_v51  ;;  %v2897_v14 = vpop.eup %2896  ;;  %v1840_v28 = vsub.f32 %v4978_v17, %v1759_v57  ;;  %v1841_v32 = vsub.f32 %v4979_v23, %v1759_v57  ;;  %v2033_v11 = vadd.f32 %v4253_v51, %v4251_v27  ;;  %2912 = vpow2.f32 %v1928_v19  ;;  %v323_v46 = vpop.f32.mrb[9].mxu0 }
 0x3d4   : > { %v1205_v34 = vmul.f32 %v2897_v14, %v4980_v1  ;;  %v1202_v24 = vmul.f32 %v2891_v45, %v4981_v6  ;;  %v1204_v29 = vmul.f32 %v2897_v14, %v4982_v41  ;;  %v4268_v10 = vpop.eup %2898  ;;  %1294 = vmatprep.mubr.f32.mxu0 %v323_v46  ;;  %2914 = vrcp.f32 %v1106_v5  ;;  %v4985_v1 = vld [vmem:[#allocation58_spill] sm:$0xff]  ;;  %v4986_v6 = vld [vmem:[#allocation60_spill] sm:$0xff] }
 0x3d5   : > { %4983 = vst [vmem:[#allocation68_spill] sm:$0xff] %v4268_v10  ;;  %v1930_v3 = vmul.f32 1.442695, %v1840_v28  ;;  %v1932_v30 = vmul.f32 1.442695, %v1841_v32  ;;  %v4270_v17 = vpop.eup %2900  ;;  %2034 = vadd.xlane.f32.xlu1 %v2033_v11  ;;  %v1762_v27 = vpop.xlane.xlu0 %1761  ;;  %v4987_v32 = vld [vmem:[#allocation22_spill] sm:$0xff] }
 0x3d6   : > { %4984 = vst [vmem:[#allocation65_spill] sm:$0xff] %v4270_v17  ;;  %v2551_v57 = vpack.c.bf16 %v1205_v34, %v1203_v21  ;;  %v1109_v23 = vpop.xlane.xlu1 %1108  ;;  %v2553_v19 = vpack.c.bf16 %v1204_v29, %v1202_v24  ;;  %v2903_v51 = vpop.eup %2902  ;;  %v1842_v45 = vsub.f32 %v4985_v1, %v1762_v27  ;;  %v1843_v41 = vsub.f32 %v4986_v6, %v1762_v27  ;;  %v4988_v27 = vld [vmem:[#allocation62_spill] sm:$0xff] }
 0x3d7   : > { %2916 = vpow2.f32 %v1930_v3  ;;  %v2036_v14 = vadd.f32 %v4270_v17, %v4268_v10  ;;  %v1207_v11 = vmul.f32 %v2903_v51, %v4987_v32  ;;  %v4989_v3 = vld [vmem:[#allocation64_spill] sm:$0xff]  ;;  %v4992_v6 = vld [vmem:[#allocation78_spill] sm:$0xff] }
 0x3d8   : > { %2918 = vpow2.f32 %v1932_v30  ;;  %2552 = vmatprep.subr.bf16.mxu0 %v2551_v57  ;;  %v1934_v5 = vmul.f32 1.442695, %v1842_v45  ;;  %v1936_v28 = vmul.f32 1.442695, %v1843_v41  ;;  %v4990_v57 = vld [vmem:[#allocation79_spill] sm:$0xff]  ;;  %v4991_v45 = vld [vmem:[#allocation21_spill] sm:$0xff] }
 0x3d9   : > { %v4276_v46 = vpop.eup %2904  ;;  %2920 = vrcp.f32 %v1109_v23  ;;  %2554 = vmatpush1.bf16.xpose.msra.mxu0 %v2553_v19  ;;  %2037 = vadd.xlane.f32.xlu0 %v2036_v14  ;;  %v1206_v19 = vmul.f32 %v2903_v51, %v4991_v45  ;;  %v4996_v45 = vld [vmem:[#allocation82_spill] sm:$0xff] }
 0x3da   : > { %v4278_v21 = vpop.eup %2906  ;;  %v1765_v29 = vpop.xlane.xlu1 %1764  ;;  %2922 = vpow2.f32 %v1934_v5 }
 0x3db   : > { %v2909_v34 = vpop.eup %2908  ;;  %v1844_v24 = vsub.f32 %v4988_v27, %v1765_v29  ;;  %v1845_v1 = vsub.f32 %v4989_v3, %v1765_v29  ;;  %v2039_v30 = vadd.f32 %v4278_v21, %v4276_v46  ;;  %2924 = vpow2.f32 %v1936_v28 }
 0x3dc   : > { %v1209_v23 = vmul.f32 %v2909_v34, %v4990_v57  ;;  %v1208_v41 = vmul.f32 %v2909_v34, %v4992_v6  ;;  %v4288_v14 = vpop.eup %2910  ;;  %v4995_v57 = vld [vmem:[#allocation80_spill] sm:$0xff] }
 0x3dd   : > { %v1938_v10 = vmul.f32 1.442695, %v1844_v24  ;;  %v1940_v32 = vmul.f32 1.442695, %v1845_v1  ;;  %2040 = vadd.xlane.f32.xlu1 %v2039_v30  ;;  %v4290_v5 = vpop.eup %2912  ;;  %v4993_v1 = vld [vmem:[#allocation81_spill] sm:$0xff]  ;;  %v4994_v30 = vld [vmem:[#allocation83_spill] sm:$0xff] }
 0x3de   : > { %v2555_v27 = vpack.c.bf16 %v1209_v23, %v1207_v11  ;;  %v2557_v17 = vpack.c.bf16 %v1208_v41, %v1206_v19  ;;  %v2042_v29 = vadd.f32 %v4290_v5, %v4288_v14  ;;  %v2915_v28 = vpop.eup %2914 }
 0x3df   : > { %2926 = vpow2.f32 %v1938_v10  ;;  %v1211_v11 = vmul.f32 %v2915_v28, %v4993_v1  ;;  %v1210_v23 = vmul.f32 %v2915_v28, %v4995_v57 }
 0x3e0   : > { %2928 = vpow2.f32 %v1940_v32  ;;  %2556 = vmatprep.subr.bf16.mxu0 %v2555_v27  ;;  %2043 = vadd.xlane.f32.xlu0 %v2042_v29 }
 0x3e1   : > { %v4294_v3 = vpop.eup %2916  ;;  %2558 = vmatpush1.bf16.xpose.msra.mxu0 %v2557_v17 }
 0x3e2   : > { %v4296_v51 = vpop.eup %2918 }
 0x3e3   : > { %v2921_v34 = vpop.eup %2920  ;;  %v2045_v24 = vadd.f32 %v4296_v51, %v4294_v3 }
 0x3e4   : > { %v1213_v10 = vmul.f32 %v2921_v34, %v4994_v30  ;;  %v1212_v19 = vmul.f32 %v2921_v34, %v4996_v45  ;;  %v4304_v6 = vpop.eup %2922 }
 0x3e5   : > { %4997 = vst [vmem:[#allocation67_spill] sm:$0xff] %v4304_v6  ;;  %2046 = vadd.xlane.f32.xlu1 %v2045_v24  ;;  %v4306_v41 = vpop.eup %2924 }
 0x3e6   : > { %v2559_v17 = vpack.c.bf16 %v1213_v10, %v1211_v11  ;;  %v2561_v32 = vpack.c.bf16 %v1212_v19, %v1210_v23  ;;  %v2048_v27 = vadd.f32 %v4306_v41, %v4304_v6 }
 0x3e8   : > { %2560 = vmatprep.subr.bf16.mxu0 %v2559_v17  ;;  %2049 = vadd.xlane.f32.xlu0 %v2048_v27 }
 0x3e9   : > { %v4310_v29 = vpop.eup %2926  ;;  %2562 = vmatpush1.bf16.xpose.msra.mxu0 %v2561_v32 }
 0x3ea   : > { %v4312_v1 = vpop.eup %2928 }
 0x3eb   : > { %v2051_v28 = vadd.f32 %v4312_v1, %v4310_v29 }
 0x3ed   : > { %2052 = vadd.xlane.f32.xlu1 %v2051_v28 }
 0x41d   : > { %v1112_v34 = vpop.xlane.xlu0 %1111 }
 0x41e   : > { %2930 = vrcp.f32 %v1112_v34 }
 0x421   : > { %v1115_v24 = vpop.xlane.xlu1 %1114 }
 0x422   : > { %2932 = vrcp.f32 %v1115_v24 }
 0x423   : > { %v1768_v30 = vpop.xlane.xlu0 %1767 }
 0x424   : > { %v1846_v11 = vsub.f32 %v3757_v35, %v1768_v30  ;;  %v1847_v10 = vsub.f32 %v3761_v47, %v1768_v30 }
 0x425   : > { %v1771_v19 = vpop.xlane.xlu1 %1770 }
 0x426   : > { %v1942_v57 = vmul.f32 1.442695, %v1846_v11  ;;  %v1944_v23 = vmul.f32 1.442695, %v1847_v10  ;;  %v1848_v17 = vsub.f32 %v3774_v62, %v1771_v19  ;;  %v1849_v32 = vsub.f32 %v3778_v50, %v1771_v19 }
 0x427   : > { %v1118_v45 = vpop.xlane.xlu0 %1117 }
 0x428   : > { %2934 = vpow2.f32 %v1942_v57  ;;  %v1946_v27 = vmul.f32 1.442695, %v1848_v17  ;;  %v1948_v28 = vmul.f32 1.442695, %v1849_v32  ;;  %v2931_v6 = vpop.eup %2930 }
 0x429   : > { %2936 = vpow2.f32 %v1944_v23  ;;  %v1215_v62 = vmul.f32 %v2931_v6, %v4036_v44  ;;  %v1214_v19 = vmul.f32 %v2931_v6, %v4034_v7 }
 0x42a   : > { %2938 = vrcp.f32 %v1118_v45  ;;  %v1121_v24 = vpop.xlane.xlu1 %1120 }
 0x42b   : > { %v1774_v34 = vpop.xlane.xlu0 %1773  ;;  %2940 = vpow2.f32 %v1946_v27 }
 0x42c   : > { %v1850_v35 = vsub.f32 %v3791_v13, %v1774_v34  ;;  %v1851_v47 = vsub.f32 %v3795_v53, %v1774_v34  ;;  %v2933_v30 = vpop.eup %2932  ;;  %2942 = vpow2.f32 %v1948_v28 }
 0x42d   : > { %2944 = vrcp.f32 %v1121_v24  ;;  %v1217_v50 = vmul.f32 %v2933_v30, %v4044_v54  ;;  %v1216_v23 = vmul.f32 %v2933_v30, %v4042_v25 }
 0x42e   : > { %v1950_v11 = vmul.f32 1.442695, %v1850_v35  ;;  %v1952_v10 = vmul.f32 1.442695, %v1851_v47  ;;  %v1777_v45 = vpop.xlane.xlu1 %1776 }
 0x42f   : > { %v1124_v57 = vpop.xlane.xlu0 %1123  ;;  %v1852_v13 = vsub.f32 %v4895_v40, %v1777_v45  ;;  %v1853_v53 = vsub.f32 %v4896_v0, %v1777_v45  ;;  %v2563_v17 = vpack.c.bf16 %v1217_v50, %v1215_v62  ;;  %v2565_v27 = vpack.c.bf16 %v1216_v23, %v1214_v19 }
 0x430   : > { %2946 = vpow2.f32 %v1950_v11 }
 0x431   : > { %2948 = vpow2.f32 %v1952_v10  ;;  %v1954_v44 = vmul.f32 1.442695, %v1852_v13  ;;  %v1956_v34 = vmul.f32 1.442695, %v1853_v53  ;;  %2564 = vmatprep.subr.bf16.mxu0 %v2563_v17  ;;  %v4998_v13 = vld [vmem:[#allocation44_spill] sm:$0xff] }
 0x432   : > { %v4328_v32 = vpop.eup %2934  ;;  %2950 = vrcp.f32 %v1124_v57  ;;  %v1127_v25 = vpop.xlane.xlu1 %1126  ;;  %2566 = vmatpush1.bf16.xpose.msra.mxu0 %v2565_v27 }
 0x433   : > { %v4330_v28 = vpop.eup %2936  ;;  %v1780_v54 = vpop.xlane.xlu0 %1779  ;;  %2952 = vpow2.f32 %v1954_v44 }
 0x434   : > { %v1854_v24 = vsub.f32 %v3825_v18, %v1780_v54  ;;  %v1855_v7 = vsub.f32 %v3829_v59, %v1780_v54  ;;  %v2054_v40 = vadd.f32 %v4330_v28, %v4328_v32  ;;  %v2939_v0 = vpop.eup %2938  ;;  %2954 = vpow2.f32 %v1956_v34 }
 0x435   : > { %v4336_v47 = vpop.eup %2940  ;;  %2956 = vrcp.f32 %v1127_v25  ;;  %v1219_v23 = vmul.f32 %v2939_v0, %v4059_v60  ;;  %v1218_v19 = vmul.f32 %v2939_v0, %v4054_v48 }
 0x436   : > { %v1958_v6 = vmul.f32 1.442695, %v1854_v24  ;;  %v1960_v35 = vmul.f32 1.442695, %v1855_v7  ;;  %2055 = vadd.xlane.f32.xlu0 %v2054_v40  ;;  %v4338_v11 = vpop.eup %2942  ;;  %v1783_v18 = vpop.xlane.xlu1 %1782 }
 0x437   : > { %v1130_v30 = vpop.xlane.xlu0 %1129  ;;  %v2945_v10 = vpop.eup %2944  ;;  %v1856_v59 = vsub.f32 %v3842_v31, %v1783_v18  ;;  %v1857_v57 = vsub.f32 %v3846_v38, %v1783_v18  ;;  %v2057_v62 = vadd.f32 %v4338_v11, %v4336_v47  ;;  %v5000_v18 = vld [vmem:[#allocation77_spill] sm:$0xff] }
 0x438   : > { %2958 = vpow2.f32 %v1958_v6  ;;  %v1221_v45 = vmul.f32 %v2945_v10, %v4067_v8  ;;  %v1220_v53 = vmul.f32 %v2945_v10, %v4998_v13  ;;  %v5003_v13 = vld [vmem:[#allocation39_spill] sm:$0xff] }
 0x439   : > { %2960 = vpow2.f32 %v1960_v35  ;;  %v1962_v27 = vmul.f32 1.442695, %v1856_v59  ;;  %v1964_v31 = vmul.f32 1.442695, %v1857_v57  ;;  %2058 = vadd.xlane.f32.xlu1 %v2057_v62  ;;  %v4999_v35 = vld [vmem:[#allocation12_spill] sm:$0xff]  ;;  %v5001_v62 = vld [vmem:[#allocation42_spill] sm:$0xff] }
 0x43a   : > { %v4344_v50 = vpop.eup %2946  ;;  %2962 = vrcp.f32 %v1130_v30  ;;  %v2567_v44 = vpack.c.bf16 %v1221_v45, %v1219_v23  ;;  %v1133_v34 = vpop.xlane.xlu1 %1132  ;;  %v2569_v60 = vpack.c.bf16 %v1220_v53, %v1218_v19  ;;  %v5002_v45 = vld [vmem:[#allocation49_spill] sm:$0xff] }
 0x43b   : > { %v4350_v17 = vpop.eup %2948  ;;  %v1786_v38 = vpop.xlane.xlu0 %1785  ;;  %2964 = vpow2.f32 %v1962_v27  ;;  %v5004_v27 = vld [vmem:[#allocation47_spill] sm:$0xff] }
 0x43c   : > { %v1858_v54 = vsub.f32 %v3859_v20, %v1786_v38  ;;  %v1859_v25 = vsub.f32 %v4919_v37, %v1786_v38  ;;  %v2060_v48 = vadd.f32 %v4350_v17, %v4344_v50  ;;  %v2951_v8 = vpop.eup %2950  ;;  %2966 = vpow2.f32 %v1964_v31  ;;  %2568 = vmatprep.subr.bf16.mxu0 %v2567_v44 }
 0x43d   : > { %v4356_v40 = vpop.eup %2952  ;;  %2968 = vrcp.f32 %v1133_v34  ;;  %2570 = vmatpush1.bf16.xpose.msra.mxu0 %v2569_v60  ;;  %v1223_v23 = vmul.f32 %v2951_v8, %v5001_v62  ;;  %v1222_v53 = vmul.f32 %v2951_v8, %v5003_v13  ;;  %v5006_v13 = vld [vmem:[#allocation55_spill] sm:$0xff] }
 0x43e   : > { %v1966_v24 = vmul.f32 1.442695, %v1858_v54  ;;  %v1968_v7 = vmul.f32 1.442695, %v1859_v25  ;;  %2061 = vadd.xlane.f32.xlu0 %v2060_v48  ;;  %v4358_v6 = vpop.eup %2954  ;;  %v1789_v20 = vpop.xlane.xlu1 %1788 }
 0x43f   : > { %v2008_v0 = vpop.xlane.xlu0 %2007  ;;  %v2957_v37 = vpop.eup %2956  ;;  %v1860_v30 = vsub.f32 %v4999_v35, %v1789_v20  ;;  %v1861_v10 = vsub.f32 %v5000_v18, %v1789_v20  ;;  %v2063_v59 = vadd.f32 %v4358_v6, %v4356_v40 }
 0x440   : > { %2970 = vpow2.f32 %v1966_v24  ;;  %v1225_v19 = vmul.f32 %v2957_v37, %v5002_v45  ;;  %v1224_v31 = vmul.f32 %v2957_v37, %v5004_v27  ;;  %v5005_v45 = vld [vmem:[#allocation48_spill] sm:$0xff]  ;;  %v5007_v27 = vld [vmem:[#allocation46_spill] sm:$0xff] }
 0x441   : > { %2972 = vpow2.f32 %v1968_v7  ;;  %v1970_v44 = vmul.f32 1.442695, %v1860_v30  ;;  %v1972_v34 = vmul.f32 1.442695, %v1861_v10  ;;  %2064 = vadd.xlane.f32.xlu1 %v2063_v59 }
 0x442   : > { %v4364_v57 = vpop.eup %2958  ;;  %2974 = vrcp.f32 %v2008_v0  ;;  %v2571_v25 = vpack.c.bf16 %v1225_v19, %v1223_v23  ;;  %v2011_v60 = vpop.xlane.xlu1 %2010  ;;  %v2573_v7 = vpack.c.bf16 %v1224_v31, %v1222_v53 }
 0x443   : > { %v4370_v38 = vpop.eup %2960  ;;  %v1792_v54 = vpop.xlane.xlu0 %1791  ;;  %2976 = vpow2.f32 %v1970_v44  ;;  %v5008_v44 = vld [vmem:[#allocation51_spill] sm:$0xff] }
 0x444   : > { %v1862_v48 = vsub.f32 %v3893_v49, %v1792_v54  ;;  %v1863_v24 = vsub.f32 %v3897_v58, %v1792_v54  ;;  %v2963_v20 = vpop.eup %2962  ;;  %v2066_v8 = vadd.f32 %v4370_v38, %v4364_v57  ;;  %2978 = vpow2.f32 %v1972_v34  ;;  %2572 = vmatprep.subr.bf16.mxu0 %v2571_v25 }
 0x445   : > { %v4376_v35 = vpop.eup %2964  ;;  %2980 = vrcp.f32 %v2011_v60  ;;  %2574 = vmatpush1.bf16.xpose.msra.mxu0 %v2573_v7  ;;  %v1227_v19 = vmul.f32 %v2963_v20, %v5005_v45  ;;  %v1226_v31 = vmul.f32 %v2963_v20, %v5007_v27  ;;  %v5010_v27 = vld [vmem:[#allocation24_spill] sm:$0xff] }
 0x446   : > { %v1974_v37 = vmul.f32 1.442695, %v1862_v48  ;;  %v1976_v0 = vmul.f32 1.442695, %v1863_v24  ;;  %2067 = vadd.xlane.f32.xlu0 %v2066_v8  ;;  %v4378_v18 = vpop.eup %2966  ;;  %v1795_v49 = vpop.xlane.xlu1 %1794 }
 0x447   : > { %v2014_v30 = vpop.xlane.xlu0 %2013  ;;  %v2969_v58 = vpop.eup %2968  ;;  %v1864_v10 = vsub.f32 %v3910_v52, %v1795_v49  ;;  %v1865_v59 = vsub.f32 %v3914_v36, %v1795_v49  ;;  %v2069_v62 = vadd.f32 %v4378_v18, %v4376_v35 }
 0x448   : > { %2982 = vpow2.f32 %v1974_v37  ;;  %v1229_v53 = vmul.f32 %v2969_v58, %v5006_v13  ;;  %v1228_v34 = vmul.f32 %v2969_v58, %v5008_v44  ;;  %v5009_v13 = vld [vmem:[#allocation53_spill] sm:$0xff]  ;;  %v5011_v44 = vld [vmem:[#allocation50_spill] sm:$0xff] }
 0x449   : > { %2984 = vpow2.f32 %v1976_v0  ;;  %v1978_v25 = vmul.f32 1.442695, %v1864_v10  ;;  %v1980_v52 = vmul.f32 1.442695, %v1865_v59  ;;  %2070 = vadd.xlane.f32.xlu1 %v2069_v62 }
 0x44a   : > { %v4384_v23 = vpop.eup %2970  ;;  %2986 = vrcp.f32 %v2014_v30  ;;  %v2575_v60 = vpack.c.bf16 %v1229_v53, %v1227_v19  ;;  %v2017_v48 = vpop.xlane.xlu1 %2016  ;;  %v2577_v8 = vpack.c.bf16 %v1228_v34, %v1226_v31 }
 0x44b   : > { %v4390_v54 = vpop.eup %2972  ;;  %v1798_v36 = vpop.xlane.xlu0 %1797  ;;  %2988 = vpow2.f32 %v1978_v25  ;;  %v5012_v25 = vld [vmem:[#allocation23_spill] sm:$0xff] }
 0x44c   : > { %v1866_v24 = vsub.f32 %v3927_v33, %v1798_v36  ;;  %v1867_v7 = vsub.f32 %v3931_v42, %v1798_v36  ;;  %v2975_v37 = vpop.eup %2974  ;;  %v2072_v20 = vadd.f32 %v4390_v54, %v4384_v23  ;;  %2990 = vpow2.f32 %v1980_v52  ;;  %2576 = vmatprep.subr.bf16.mxu0 %v2575_v60 }
 0x44d   : > { %v4396_v49 = vpop.eup %2976  ;;  %2992 = vrcp.f32 %v2017_v48  ;;  %2578 = vmatpush1.bf16.xpose.msra.mxu0 %v2577_v8  ;;  %v2135_v53 = vmul.f32 %v2975_v37, %v5009_v13  ;;  %v2134_v34 = vmul.f32 %v2975_v37, %v5011_v44 }
 0x44e   : > { %v1982_v0 = vmul.f32 1.442695, %v1866_v24  ;;  %v1984_v30 = vmul.f32 1.442695, %v1867_v7  ;;  %2073 = vadd.xlane.f32.xlu0 %v2072_v20  ;;  %v4398_v10 = vpop.eup %2978  ;;  %v1801_v33 = vpop.xlane.xlu1 %1800 }
 0x44f   : > { %v2020_v58 = vpop.xlane.xlu0 %2019  ;;  %v2981_v42 = vpop.eup %2980  ;;  %v1868_v59 = vsub.f32 %v3944_v15, %v1801_v33  ;;  %v1869_v62 = vsub.f32 %v3948_v22, %v1801_v33  ;;  %v2075_v45 = vadd.f32 %v4398_v10, %v4396_v49 }
 0x450   : > { %2994 = vpow2.f32 %v1982_v0  ;;  %v2137_v31 = vmul.f32 %v2981_v42, %v5010_v27  ;;  %v2136_v52 = vmul.f32 %v2981_v42, %v5012_v25 }
 0x451   : > { %2996 = vpow2.f32 %v1984_v30  ;;  %v1986_v60 = vmul.f32 1.442695, %v1868_v59  ;;  %v1988_v15 = vmul.f32 1.442695, %v1869_v62  ;;  %2076 = vadd.xlane.f32.xlu1 %v2075_v45 }
 0x452   : > { %v4404_v19 = vpop.eup %2982  ;;  %2998 = vrcp.f32 %v2020_v58  ;;  %v2579_v48 = vpack.c.bf16 %v2137_v31, %v2135_v53  ;;  %v2023_v24 = vpop.xlane.xlu1 %2022  ;;  %v2581_v20 = vpack.c.bf16 %v2136_v52, %v2134_v34  ;;  %v5013_v53 = vld [vmem:[#allocation74_spill] sm:$0xff]  ;;  %v5014_v31 = vld [vmem:[#allocation25_spill] sm:$0xff]  ;;  %v5015_v34 = vld [vmem:[#allocation72_spill] sm:$0xff] }
 0x453   : > { %v4410_v36 = vpop.eup %2984  ;;  %v1804_v22 = vpop.xlane.xlu0 %1803  ;;  %3000 = vpow2.f32 %v1986_v60  ;;  %v5016_v52 = vld [vmem:[#allocation59_spill] sm:$0xff] }
 0x454   : > { %v1870_v7 = vsub.f32 %v3961_v26, %v1804_v22  ;;  %v1871_v8 = vsub.f32 %v3965_v56, %v1804_v22  ;;  %v2987_v0 = vpop.eup %2986  ;;  %v2078_v37 = vadd.f32 %v4410_v36, %v4404_v19  ;;  %3002 = vpow2.f32 %v1988_v15  ;;  %2580 = vmatprep.subr.bf16.mxu0 %v2579_v48  ;;  %1295 = vmatmul.mubr.f32.vlgmr.msra.gmra.mrb[12].mxu0 %v4263_v63 }
 0x455   : > { %v4417_v33 = vpop.eup %2988  ;;  %3004 = vrcp.f32 %v2023_v24  ;;  %2582 = vmatpush1.bf16.xpose.msra.mxu0 %v2581_v20  ;;  %v2139_v27 = vmul.f32 %v2987_v0, %v5013_v53  ;;  %v2138_v25 = vmul.f32 %v2987_v0, %v5015_v34  ;;  %v5018_v34 = vld [vmem:[#allocation26_spill] sm:$0xff] }
 0x456   : > { %v1990_v30 = vmul.f32 1.442695, %v1870_v7  ;;  %v1992_v58 = vmul.f32 1.442695, %v1871_v8  ;;  %2079 = vadd.xlane.f32.xlu0 %v2078_v37  ;;  %v4419_v42 = vpop.eup %2990  ;;  %v1807_v56 = vpop.xlane.xlu1 %1806 }
 0x457   : > { %v2026_v26 = vpop.xlane.xlu0 %2025  ;;  %v2993_v59 = vpop.eup %2992  ;;  %v1872_v62 = vsub.f32 %v3976_v61, %v1807_v56  ;;  %v1873_v45 = vsub.f32 %v3980_v4, %v1807_v56  ;;  %v2081_v13 = vadd.f32 %v4419_v42, %v4417_v33 }
 0x458   : > { %3006 = vpow2.f32 %v1990_v30  ;;  %v2141_v44 = vmul.f32 %v2993_v59, %v5014_v31  ;;  %v2140_v60 = vmul.f32 %v2993_v59, %v5016_v52  ;;  %v5019_v52 = vld [vmem:[#allocation57_spill] sm:$0xff] }
 0x459   : > { %3008 = vpow2.f32 %v1992_v58  ;;  %v1994_v22 = vmul.f32 1.442695, %v1872_v62  ;;  %v1996_v61 = vmul.f32 1.442695, %v1873_v45  ;;  %2082 = vadd.xlane.f32.xlu1 %v2081_v13 }
 0x45a   : > { %v4425_v63 = vpop.eup %2994  ;;  %3010 = vrcp.f32 %v2026_v26  ;;  %v2029_v48 = vpop.xlane.xlu1 %2028  ;;  %v2583_v8 = vpack.c.bf16 %v2141_v44, %v2139_v27  ;;  %v2585_v20 = vpack.c.bf16 %v2140_v60, %v2138_v25  ;;  %v5017_v27 = vld [vmem:[#allocation63_spill] sm:$0xff] }
 0x45b   : > { %v4431_v15 = vpop.eup %2996  ;;  %v1810_v4 = vpop.xlane.xlu0 %1809  ;;  %3012 = vpow2.f32 %v1994_v22 }
 0x45c   : > { %v1874_v24 = vsub.f32 %v3991_v16, %v1810_v4  ;;  %v1875_v7 = vsub.f32 %v3995_v12, %v1810_v4  ;;  %v2999_v37 = vpop.eup %2998  ;;  %v2084_v0 = vadd.f32 %v4431_v15, %v4425_v63  ;;  %3014 = vpow2.f32 %v1996_v61  ;;  %2584 = vmatprep.subr.bf16.mxu0 %v2583_v8 }
 0x45d   : > { %v4437_v26 = vpop.eup %3000  ;;  %3016 = vrcp.f32 %v2029_v48  ;;  %2586 = vmatpush1.bf16.xpose.msra.mxu0 %v2585_v20  ;;  %v2143_v31 = vmul.f32 %v2999_v37, %v5017_v27  ;;  %v2142_v25 = vmul.f32 %v2999_v37, %v5018_v34 }
 0x45e   : > { %v1998_v30 = vmul.f32 1.442695, %v1874_v24  ;;  %v2000_v58 = vmul.f32 1.442695, %v1875_v7  ;;  %2085 = vadd.xlane.f32.xlu0 %v2084_v0  ;;  %v4439_v56 = vpop.eup %3002  ;;  %v1813_v12 = vpop.xlane.xlu1 %1812 }
 0x45f   : > { %v3005_v16 = vpop.eup %3004  ;;  %v2032_v59 = vpop.xlane.xlu0 %2031  ;;  %v1876_v62 = vsub.f32 %v4006_v2, %v1813_v12  ;;  %v1877_v45 = vsub.f32 %v4975_v39, %v1813_v12  ;;  %v2087_v13 = vadd.f32 %v4439_v56, %v4437_v26 }
 0x460   : > { %3018 = vpow2.f32 %v1998_v30  ;;  %v2145_v44 = vmul.f32 %v3005_v16, %v4200_v43  ;;  %v2144_v60 = vmul.f32 %v3005_v16, %v5019_v52  ;;  %v5020_v16 = vld [vmem:[#allocation61_spill] sm:$0xff] }
 0x461   : > { %3020 = vpow2.f32 %v2000_v58  ;;  %v2002_v61 = vmul.f32 1.442695, %v1876_v62  ;;  %v2004_v4 = vmul.f32 1.442695, %v1877_v45  ;;  %2088 = vadd.xlane.f32.xlu1 %v2087_v13  ;;  %v5021_v62 = vld [vmem:[#allocation27_spill] sm:$0xff] }
 0x462   : > { %v4445_v53 = vpop.eup %3006  ;;  %3022 = vrcp.f32 %v2032_v59  ;;  %v2035_v2 = vpop.xlane.xlu1 %2034  ;;  %v2587_v39 = vpack.c.bf16 %v2145_v44, %v2143_v31  ;;  %v2589_v48 = vpack.c.bf16 %v2144_v60, %v2142_v25 }
 0x463   : > { %v4451_v22 = vpop.eup %3008  ;;  %3024 = vpow2.f32 %v2002_v61 }
 0x464   : > { %v2090_v24 = vadd.f32 %v4451_v22, %v4445_v53  ;;  %v3011_v7 = vpop.eup %3010  ;;  %3026 = vpow2.f32 %v2004_v4  ;;  %2588 = vmatprep.subr.bf16.mxu0 %v2587_v39  ;;  %v5022_v4 = vld [vmem:[#allocation66_spill] sm:$0xff] }
 0x465   : > { %v4455_v43 = vpop.eup %3012  ;;  %3028 = vrcp.f32 %v2035_v2  ;;  %2590 = vmatpush1.bf16.xpose.msra.mxu0 %v2589_v48  ;;  %v2147_v30 = vmul.f32 %v3011_v7, %v4219_v55  ;;  %v2146_v59 = vmul.f32 %v3011_v7, %v5020_v16  ;;  %v5023_v39 = vld [vmem:[#allocation30_spill] sm:$0xff] }
 0x466   : > { %2091 = vadd.xlane.f32.xlu0 %v2090_v24  ;;  %v2038_v8 = vpop.xlane.xlu0 %2037  ;;  %v4457_v20 = vpop.eup %3014  ;;  %v5024_v24 = vld [vmem:[#allocation28_spill] sm:$0xff] }
 0x467   : > { %v3017_v37 = vpop.eup %3016  ;;  %v2093_v0 = vadd.f32 %v4457_v20, %v4455_v43  ;;  %3030 = vrcp.f32 %v2038_v8  ;;  %v5025_v8 = vld [vmem:[#allocation29_spill] sm:$0xff] }
 0x468   : > { %v2149_v12 = vmul.f32 %v3017_v37, %v4227_v9  ;;  %v2148_v45 = vmul.f32 %v3017_v37, %v5021_v62 }
 0x469   : > { %2094 = vadd.xlane.f32.xlu1 %v2093_v0 }
 0x46a   : > { %v4462_v58 = vpop.eup %3018  ;;  %v2041_v27 = vpop.xlane.xlu1 %2040  ;;  %v2591_v31 = vpack.c.bf16 %v2149_v12, %v2147_v30  ;;  %v2593_v44 = vpack.c.bf16 %v2148_v45, %v2146_v59  ;;  %v5026_v45 = vld [vmem:[#allocation65_spill] sm:$0xff] }
 0x46b   : > { %v4467_v13 = vpop.eup %3020  ;;  %3032 = vrcp.f32 %v2041_v27 }
 0x46c   : > { %v2096_v34 = vadd.f32 %v4467_v13, %v4462_v58  ;;  %v3023_v55 = vpop.eup %3022  ;;  %2592 = vmatprep.subr.bf16.mxu0 %v2591_v31 }
 0x46d   : > { %v4471_v25 = vpop.eup %3024  ;;  %2594 = vmatpush1.bf16.xpose.msra.mxu0 %v2593_v44  ;;  %v2044_v9 = vpop.xlane.xlu0 %2043  ;;  %v2151_v2 = vmul.f32 %v3023_v55, %v5022_v4  ;;  %v2150_v7 = vmul.f32 %v3023_v55, %v5024_v24  ;;  %v5027_v55 = vld [vmem:[#allocation68_spill] sm:$0xff] }
 0x46e   : > { %2097 = vadd.xlane.f32.xlu0 %v2096_v34  ;;  %v4473_v52 = vpop.eup %3026  ;;  %3034 = vrcp.f32 %v2044_v9 }
 0x46f   : > { %v3029_v60 = vpop.eup %3028  ;;  %v2099_v61 = vadd.f32 %v4473_v52, %v4471_v25 }
 0x470   : > { %v2153_v48 = vmul.f32 %v3029_v60, %v5023_v39  ;;  %v2152_v37 = vmul.f32 %v3029_v60, %v5025_v8 }
 0x471   : > { %2100 = vadd.xlane.f32.xlu1 %v2099_v61  ;;  %v3031_v30 = vpop.eup %3030 }
 0x472   : > { %v2047_v0 = vpop.xlane.xlu1 %2046  ;;  %v2595_v12 = vpack.c.bf16 %v2153_v48, %v2151_v2  ;;  %v2597_v16 = vpack.c.bf16 %v2152_v37, %v2150_v7  ;;  %v2155_v27 = vmul.f32 %v3031_v30, %v5026_v45  ;;  %v2154_v9 = vmul.f32 %v3031_v30, %v5027_v55 }
 0x473   : > { %3036 = vrcp.f32 %v2047_v0 }
 0x474   : > { %2596 = vmatprep.subr.bf16.mxu0 %v2595_v12 }
 0x475   : > { %v3033_v59 = vpop.eup %3032  ;;  %2598 = vmatpush1.bf16.xpose.msra.mxu0 %v2597_v16  ;;  %v2050_v62 = vpop.xlane.xlu0 %2049 }
 0x476   : > { %v2157_v31 = vmul.f32 %v3033_v59, %v4278_v21  ;;  %v2156_v44 = vmul.f32 %v3033_v59, %v4276_v46  ;;  %3038 = vrcp.f32 %v2050_v62 }
 0x478   : > { %v2599_v34 = vpack.c.bf16 %v2157_v31, %v2155_v27  ;;  %v2601_v61 = vpack.c.bf16 %v2156_v44, %v2154_v9  ;;  %v3035_v4 = vpop.eup %3034 }
 0x479   : > { %v2159_v39 = vmul.f32 %v3035_v4, %v4290_v5  ;;  %v2158_v46 = vmul.f32 %v3035_v4, %v4288_v14  ;;  %v5028_v5 = vld [vmem:[#allocation67_spill] sm:$0xff] }
 0x47a   : > { %v2053_v60 = vpop.xlane.xlu1 %2052  ;;  %2600 = vmatprep.subr.bf16.mxu0 %v2599_v34 }
 0x47b   : > { %3040 = vrcp.f32 %v2053_v60 }
 0x47d   : > { %v3037_v2 = vpop.eup %3036  ;;  %2602 = vmatpush1.bf16.xpose.msra.mxu0 %v2601_v61 }
 0x47e   : > { %v2161_v48 = vmul.f32 %v3037_v2, %v4296_v51  ;;  %v2160_v24 = vmul.f32 %v3037_v2, %v4294_v3 }
 0x480   : > { %v2603_v21 = vpack.c.bf16 %v2161_v48, %v2159_v39  ;;  %v2605_v7 = vpack.c.bf16 %v2160_v24, %v2158_v46  ;;  %v3039_v8 = vpop.eup %3038 }
 0x481   : > { %v2163_v0 = vmul.f32 %v3039_v8, %v4306_v41  ;;  %v2162_v59 = vmul.f32 %v3039_v8, %v5028_v5 }
 0x482   : > { %2604 = vmatprep.subr.bf16.mxu0 %v2603_v21 }
 0x485   : > { %v3041_v37 = vpop.eup %3040  ;;  %2606 = vmatpush1.bf16.xpose.msra.mxu0 %v2605_v7 }
 0x486   : > { %v2165_v30 = vmul.f32 %v3041_v37, %v4312_v1  ;;  %v2164_v12 = vmul.f32 %v3041_v37, %v4310_v29 }
 0x488   : > { %v2607_v16 = vpack.c.bf16 %v2165_v30, %v2163_v0  ;;  %v2609_v51 = vpack.c.bf16 %v2164_v12, %v2162_v59 }
 0x48a   : > { %2608 = vmatprep.subr.bf16.mxu0 %v2607_v16 }
 0x48d   : > { %2610 = vmatpush1.bf16.xpose.msra.mxu0 %v2609_v51 }
 0x492   : > { %v4493_v3 = vpop.f32.mrb[10].mxu0 }
 0x493   : > { %v329_v14 = vpop.f32.mrb[11].mxu0 }
 0x494   : > { %2262 = vmatprep.mubr.f32.mxu0 %v329_v14 }
 0x4c3   : > { %v2056_v62 = vpop.xlane.xlu0 %2055 }
 0x4c4   : > { %3042 = vrcp.f32 %v2056_v62 }
 0x4c6   : > { %v2059_v45 = vpop.xlane.xlu1 %2058 }
 0x4c7   : > { %3044 = vrcp.f32 %v2059_v45 }
 0x4cb   : > { %v2062_v27 = vpop.xlane.xlu0 %2061 }
 0x4cc   : > { %3046 = vrcp.f32 %v2062_v27 }
 0x4ce   : > { %v2065_v41 = vpop.xlane.xlu1 %2064  ;;  %v3043_v1 = vpop.eup %3042 }
 0x4cf   : > { %3048 = vrcp.f32 %v2065_v41  ;;  %v2167_v44 = vmul.f32 %v3043_v1, %v4330_v28  ;;  %v2166_v55 = vmul.f32 %v3043_v1, %v4328_v32 }
 0x4d1   : > { %v3045_v29 = vpop.eup %3044 }
 0x4d2   : > { %v2169_v34 = vmul.f32 %v3045_v29, %v4338_v11  ;;  %v2168_v9 = vmul.f32 %v3045_v29, %v4336_v47 }
 0x4d3   : > { %v2068_v31 = vpop.xlane.xlu0 %2067 }
 0x4d4   : > { %v2611_v60 = vpack.c.bf16 %v2169_v34, %v2167_v44  ;;  %v2613_v61 = vpack.c.bf16 %v2168_v9, %v2166_v55  ;;  %3050 = vrcp.f32 %v2068_v31 }
 0x4d6   : > { %v2071_v4 = vpop.xlane.xlu1 %2070  ;;  %2612 = vmatprep.subr.bf16.mxu0 %v2611_v60  ;;  %v3047_v2 = vpop.eup %3046 }
 0x4d7   : > { %3052 = vrcp.f32 %v2071_v4  ;;  %2614 = vmatpush1.bf16.xpose.msra.mxu0 %v2613_v61  ;;  %v2171_v24 = vmul.f32 %v3047_v2, %v4350_v17  ;;  %v2170_v11 = vmul.f32 %v3047_v2, %v4344_v50 }
 0x4d9   : > { %v3049_v39 = vpop.eup %3048 }
 0x4da   : > { %v2173_v28 = vmul.f32 %v3049_v39, %v4358_v6  ;;  %v2172_v32 = vmul.f32 %v3049_v39, %v4356_v40 }
 0x4db   : > { %v2074_v48 = vpop.xlane.xlu0 %2073 }
 0x4dc   : > { %v2615_v21 = vpack.c.bf16 %v2173_v28, %v2171_v24  ;;  %v2617_v47 = vpack.c.bf16 %v2172_v32, %v2170_v11  ;;  %3054 = vrcp.f32 %v2074_v48 }
 0x4de   : > { %v2077_v46 = vpop.xlane.xlu1 %2076  ;;  %2616 = vmatprep.subr.bf16.mxu0 %v2615_v21  ;;  %v3051_v7 = vpop.eup %3050 }
 0x4df   : > { %3056 = vrcp.f32 %v2077_v46  ;;  %2618 = vmatpush1.bf16.xpose.msra.mxu0 %v2617_v47  ;;  %v2175_v0 = vmul.f32 %v3051_v7, %v4370_v38  ;;  %v2174_v6 = vmul.f32 %v3051_v7, %v4364_v57  ;;  %v204_v46 = vld [vmem:[%s4584_s3] sm:$0xf] }
 0x4e1   : > { %v3053_v8 = vpop.eup %3052 }
 0x4e2   : > { %v2177_v17 = vmul.f32 %v3053_v8, %v4378_v18  ;;  %v2176_v50 = vmul.f32 %v3053_v8, %v4376_v35 }
 0x4e3   : > { %v2080_v37 = vpop.xlane.xlu0 %2079 }
 0x4e4   : > { %v2619_v30 = vpack.c.bf16 %v2177_v17, %v2175_v0  ;;  %v2621_v40 = vpack.c.bf16 %v2176_v50, %v2174_v6  ;;  %3058 = vrcp.f32 %v2080_v37 }
 0x4e6   : > { %v2083_v12 = vpop.xlane.xlu1 %2082  ;;  %2620 = vmatprep.subr.bf16.mxu0 %v2619_v30  ;;  %v3055_v16 = vpop.eup %3054 }
 0x4e7   : > { %3060 = vrcp.f32 %v2083_v12  ;;  %2622 = vmatpush1.bf16.xpose.msra.mxu0 %v2621_v40  ;;  %v2179_v51 = vmul.f32 %v3055_v16, %v4390_v54  ;;  %v2178_v18 = vmul.f32 %v3055_v16, %v4384_v23 }
 0x4e9   : > { %v3057_v5 = vpop.eup %3056 }
 0x4ea   : > { %v2181_v38 = vmul.f32 %v3057_v5, %v4398_v10  ;;  %v2180_v57 = vmul.f32 %v3057_v5, %v4396_v49 }
 0x4eb   : > { %v2086_v59 = vpop.xlane.xlu0 %2085 }
 0x4ec   : > { %v2623_v14 = vpack.c.bf16 %v2181_v38, %v2179_v51  ;;  %v2625_v35 = vpack.c.bf16 %v2180_v57, %v2178_v18  ;;  %3062 = vrcp.f32 %v2086_v59 }
 0x4ee   : > { %v2089_v62 = vpop.xlane.xlu1 %2088  ;;  %2624 = vmatprep.subr.bf16.mxu0 %v2623_v14  ;;  %v3059_v45 = vpop.eup %3058 }
 0x4ef   : > { %3064 = vrcp.f32 %v2089_v62  ;;  %2626 = vmatpush1.bf16.xpose.msra.mxu0 %v2625_v35  ;;  %v2183_v1 = vmul.f32 %v3059_v45, %v4410_v36  ;;  %v2182_v10 = vmul.f32 %v3059_v45, %v4404_v19 }
 0x4f1   : > { %v3061_v27 = vpop.eup %3060 }
 0x4f2   : > { %v2185_v54 = vmul.f32 %v3061_v27, %v4419_v42  ;;  %v2184_v23 = vmul.f32 %v3061_v27, %v4417_v33 }
 0x4f3   : > { %v2092_v41 = vpop.xlane.xlu0 %2091 }
 0x4f4   : > { %v2627_v29 = vpack.c.bf16 %v2185_v54, %v2183_v1  ;;  %v2629_v49 = vpack.c.bf16 %v2184_v23, %v2182_v10  ;;  %3066 = vrcp.f32 %v2092_v41 }
 0x4f6   : > { %v2095_v31 = vpop.xlane.xlu1 %2094  ;;  %2628 = vmatprep.subr.bf16.mxu0 %v2627_v29  ;;  %v3063_v44 = vpop.eup %3062 }
 0x4f7   : > { %3068 = vrcp.f32 %v2095_v31  ;;  %2630 = vmatpush1.bf16.xpose.msra.mxu0 %v2629_v49  ;;  %v2187_v9 = vmul.f32 %v3063_v44, %v4431_v15  ;;  %v2186_v42 = vmul.f32 %v3063_v44, %v4425_v63 }
 0x4f9   : > { %v3065_v34 = vpop.eup %3064 }
 0x4fa   : > { %v2189_v36 = vmul.f32 %v3065_v34, %v4439_v56  ;;  %v2188_v19 = vmul.f32 %v3065_v34, %v4437_v26 }
 0x4fb   : > { %v2098_v55 = vpop.xlane.xlu0 %2097 }
 0x4fc   : > { %v2631_v60 = vpack.c.bf16 %v2189_v36, %v2187_v9  ;;  %v2633_v33 = vpack.c.bf16 %v2188_v19, %v2186_v42  ;;  %3070 = vrcp.f32 %v2098_v55 }
 0x4fe   : > { %v2101_v61 = vpop.xlane.xlu1 %2100  ;;  %2632 = vmatprep.subr.bf16.mxu0 %v2631_v60  ;;  %v3067_v4 = vpop.eup %3066 }
 0x4ff   : > { %3072 = vrcp.f32 %v2101_v61  ;;  %2634 = vmatpush1.bf16.xpose.msra.mxu0 %v2633_v33  ;;  %v2191_v39 = vmul.f32 %v3067_v4, %v4451_v22  ;;  %v2190_v15 = vmul.f32 %v3067_v4, %v4445_v53 }
 0x501   : > { %v3069_v2 = vpop.eup %3068 }
 0x502   : > { %v2193_v48 = vmul.f32 %v3069_v2, %v4457_v20  ;;  %v2192_v56 = vmul.f32 %v3069_v2, %v4455_v43 }
 0x504   : > { %v2635_v63 = vpack.c.bf16 %v2193_v48, %v2191_v39  ;;  %v2637_v24 = vpack.c.bf16 %v2192_v56, %v2190_v15 }
 0x506   : > { %2636 = vmatprep.subr.bf16.mxu0 %v2635_v63  ;;  %v3071_v26 = vpop.eup %3070 }
 0x507   : > { %2638 = vmatpush1.bf16.xpose.msra.mxu0 %v2637_v24  ;;  %v2195_v11 = vmul.f32 %v3071_v26, %v4467_v13  ;;  %v2194_v21 = vmul.f32 %v3071_v26, %v4462_v58  ;;  %v3139_v13 = vmov 0  }
 0x508   : > { %2688 = vset.pattern.permute.xlu0 %v3139_v13 }
 0x509   : > { %v3073_v28 = vpop.eup %3072  ;;  %2271 = vperm.xlu0 %2688, %v204_v46  }
 0x50a   : > { %v2197_v32 = vmul.f32 %v3073_v28, %v4473_v52  ;;  %v2196_v22 = vmul.f32 %v3073_v28, %v4471_v25 }
 0x50c   : > { %v2639_v47 = vpack.c.bf16 %v2197_v32, %v2195_v11  ;;  %v2641_v20 = vpack.c.bf16 %v2196_v22, %v2194_v21 }
 0x50e   : > { %2640 = vmatprep.subr.bf16.mxu0 %v2639_v47 }
 0x50f   : > { %2642 = vmatpush1.bf16.xpose.msra.mxu0 %v2641_v20 }
 0x516   : > { %2263 = vmatmul.mubr.f32.vlgmr.msra.gmra.mrb[14].mxu0 %v4493_v3  ;;  %v203_v3 = vld [vmem:[%s4583_s2] sm:$0xf] }
 0x527   : > { %v1296_v53 = vpop.f32.mrb[12].mxu0 }
 0x528   : > { %v1298_v43 = vpop.f32.mrb[13].mxu0 }
 0x588   : > { %v2272_v8 = vpop.permute.xlu0 %2271 }
 0x5e9   : > { %v2264_v58 = vpop.f32.mrb[14].mxu0 }
 0x5ea   : > { %v2645_v52 = vpack.c.bf16 %v2264_v58, %v1296_v53  ;;  %v2266_v25 = vpop.f32.mrb[15].mxu0 }
 0x5eb   : > { %v2643_v7 = vpack.c.bf16 %v2266_v25, %v1298_v43 }
 0x5ed   : > { %2644 = vmatprep.subr.bf16.mxu1 %v2643_v7 }
 0x5ee   : > { %2646 = vmatpush1.bf16.msra.mxu1 %v2645_v52 }
 0x5f1   : > { %2507 = vmatmul.mubr.msk.f32.vlgmr.msra.gmra.mrb[128].mxu1 %vm2274_vm3, %v203_v3 }
 0x6c4   : > { %v2344_v37 = vpop.f32.mrb[128].mxu1 }
 0x6c5   : > { %v2345_v0 = vadd.f32 %v2344_v37, %v2272_v8  ;;  %v2346_v17 = vpop.f32.mrb[129].mxu1 }
 0x6c6   : > { %v2347_v6 = vadd.f32 %v2346_v17, %v2272_v8 }
 0x6c8   : > { %v2351_v50 = vcombine.low %v2345_v0, %v2347_v6 }
 0x6ca   : > { %2353 = vst [vmem:[%s190_s8] sm:$0xff] %v2351_v50 }
 0x6cb   : > { %3087 = shalt.err (!%p3084_p3)
}
 0x6cc   : > { %s3088_s23 = scalar_lea.hbm %s4539_s12, 128  ;;  %s3092_s29 = scalar_lea.hbm %s4585_s4, 256 }
 0x6cd   : > { %p3089_p4 = scmp.ne.s32.totalorder %s4539_s12, %s3088_s23  ;;  %p3093_p9 = scmp.lt.u32.totalorder %s4539_s12, %s4585_s4 }
 0x6ce   : > { %p3094_p10 = scmp.lt.u32.totalorder %s3092_s29, %s3088_s23  ;;  %p3096_p12 = scmp.lt.u32.totalorder %s3088_s23, %s4539_s12 }
 0x6cf   : > { %p3090_p7 = pnand %p3089_p4, %p3204_p5 }
 0x6d0   : > { %p3095_p11 = por %p3094_p10, %p3093_p9 }
 0x6d1   : > { %p3091_p8 = pneg %p3090_p7 }
 0x6d2   : > { %p3097_p13 = por %p3096_p12, %p3095_p11 }
 0x6d4   : > { %p3098_p0 = pnand %p3097_p13, %p3091_p8 }
 0x6d6   : > { %3101 = shalt.err (!%p3098_p0)
}
 0x6d7   : > { %2647 = dma.vmem_to_hbm [thread:$0]  (%p3204_p5), %s4541_s9, 128, %s4539_s12, %s2355_s13  }
 0x6d8 PF: > { %p2653_p1 = scmp.ge.s32.totalorder %s3136_s18, 2  ;;  %s2381_s6 = sand.u32 1, %s3124_s15  }
 0x6d9   : > { %s2382_s7 = scalar_lea.sflag [#allocation3], %s2381_s6 }
 0x6da   : > { %p2650_p2 = pnand %p2653_p1, %p3208_p6 }
 0x6dc   : > { %3119 = dma.done.wait (!%p2650_p2), %s2382_s7, 128  }
 0x6dd   : > { %3121 = vsyncadd (!%p2650_p2), %s2382_s7, 4294967168  ;;  %p14_p3 = scmp.ge.s32.totalorder %s3191_s21, 4   ;;  %s5029_s15 = smov %s3128_s16 }
 0x6de   : > { %s5030_s16 = smov %s3132_s17  ;;  %s5031_s17 = smov %s3202_s24 }
 0x6df   : > { %s5032_s18 = smov %s3191_s21  ;;  %16 = sbr.rel (!%p14_p3) target bundleno = 3 (0x3), region = 71 }
 0x6e6   :  { %2387 = vsyncpa [#allocation3], 1 }
 0x6e7   :  { %2389 = vsyncpa [#allocation3 + $0x1], 1 }

</bundles_post_ra>
